<compile_context>
chip_gen: v7x
topology: tpu7x:2x2x1
jax: 0.10.0
libtpu: 0.0.40
codegen_flags: <defaults>
</compile_context>

<pallas_src>
import functools
import math

import jax
import jax.numpy as jnp
from jax.experimental import pallas as pl
from jax.experimental.pallas import tpu as pltpu


def _round_up(x, k):
    return ((x + k - 1) // k) * k


def _vmem_limit_bytes():
    """Generation-aware scoped-VMEM limit (leave headroom below physical)."""
    try:
        info = pltpu.get_tpu_info()
        cap = getattr(info, "vmem_capacity_bytes", None)
        if cap:
            return min(int(cap * 0.8), 100 * 1024 * 1024)
    except Exception:
        pass
    return 48 * 1024 * 1024  # safe on v5e/v6e (128 MiB) and v7x (64 MiB)


def _pick_n1_chunk(h2):
    """Chunk width for the (padded) 2H intermediate dimension."""
    if h2 <= 512:
        return h2
    if h2 % 512 == 0:
        return 512
    if h2 % 256 == 0:
        return 256
    if h2 % 128 == 0:
        return 128
    return h2


def _pick_tile_m(m, h_pad, budget_bytes):
    """Largest row tile that (a) divides m, (b) fits the activation budget and
    (c) still leaves >= 2 M tiles so both v7x TensorCores get work."""
    row_bytes = 4 * (4 * h_pad + 2 * 512)  # x/out buffers + f32 intermediate
    cap = max(8, budget_bytes // max(row_bytes, 1))
    best = None
    for t in (2048, 1024, 512, 256, 128, 64, 32, 16, 8):
        if t <= cap and m % t == 0:
            if m // t >= 2:
                return t
            if best is None:
                best = t
    return best if best is not None else m


def _apply_pair(act_f32, w1_ref, b1_ref, w2_ref, b2_ref, n1_chunk, mxu_dtype):
    """One (H->2H, 2H->H) pair.  bf16 MXU operands, f32 accumulation/bias.

    act_f32 : [TM, Hp]  f32 value
    w1_ref  : [Hp, H2p] ref (bf16)     b1_ref : [1, H2p] ref (f32)
    w2_ref  : [H2p, Hp] ref (bf16)     b2_ref : [1, Hp]  ref (f32)
    """
    h2 = w1_ref.shape[-1]
    a = act_f32.astype(mxu_dtype)
    acc = None
    for lo in range(0, h2, n1_chunk):      # static python loop, static slices
        h_c = jnp.dot(a, w1_ref[:, pl.ds(lo, n1_chunk)],
                      preferred_element_type=jnp.float32)
        h_c = h_c + b1_ref[:, pl.ds(lo, n1_chunk)]
        contrib = jnp.dot(h_c.astype(mxu_dtype), w2_ref[pl.ds(lo, n1_chunk), :],
                          preferred_element_type=jnp.float32)
        acc = contrib if acc is None else acc + contrib
    return acc + b2_ref[...]


def _resident_kernel(x_ref, w1_ref, b1_ref, w2_ref, b2_ref, o_ref,
                     *, num_pairs, n1_chunk, mxu_dtype):
    """Grid = (M_tiles,).  All 7 pairs' weights are VMEM-resident (constant
    index_map), the pair loop is unrolled inside the body."""
    act = x_ref[...].astype(jnp.float32)
    for p in range(num_pairs):
        act = _apply_pair(act, w1_ref.at[p], b1_ref.at[p],
                          w2_ref.at[p], b2_ref.at[p], n1_chunk, mxu_dtype)
    o_ref[...] = act.astype(o_ref.dtype)


def _stream_kernel(x_ref, w1_ref, b1_ref, w2_ref, b2_ref, o_ref,
                   *, n1_chunk, mxu_dtype):
    """Grid = (M_tiles, num_pairs); pair axis innermost / "arbitrary".
    The f32 activation is carried in o_ref (constant block index across the
    pair axis -> VMEM-resident, written to HBM once per M tile)."""
    p = pl.program_id(1)

    @pl.when(p == 0)
    def _():
        o_ref[...] = x_ref[...].astype(o_ref.dtype)

    act = o_ref[...].astype(jnp.float32)
    y = _apply_pair(act, w1_ref, b1_ref, w2_ref, b2_ref, n1_chunk, mxu_dtype)
    o_ref[...] = y.astype(o_ref.dtype)


def fused_pairs(x2d, w1, b1, w2, b2, *, mxu_dtype=jnp.bfloat16,
                force_streaming=False):
    """Apply all stacked linear pairs to x2d in one fused Pallas kernel.

    x2d: [M, H], w1: [P, H, 2H], b1: [P, 1, 2H], w2: [P, 2H, H], b2: [P, 1, H]
    Returns [M, H] float32.
    """
    M, H = x2d.shape
    P, _, H2 = w1.shape

    # Lane/MXU-aligned zero padding (exact: padded activation columns stay 0).
    H_pad = _round_up(max(H, 128), 128)
    H2_pad = _round_up(max(H2, 256), 256)
    M_pad = _round_up(M, 8)

    x_p = jnp.zeros((M_pad, H_pad), jnp.float32).at[:M, :H].set(
        x2d.astype(jnp.float32))
    w1_p = jnp.zeros((P, H_pad, H2_pad), mxu_dtype).at[:, :H, :H2].set(
        w1.astype(mxu_dtype))
    b1_p = jnp.zeros((P, 1, H2_pad), jnp.float32).at[:, :, :H2].set(
        b1.astype(jnp.float32))
    w2_p = jnp.zeros((P, H2_pad, H_pad), mxu_dtype).at[:, :H2, :H].set(
        w2.astype(mxu_dtype))
    b2_p = jnp.zeros((P, 1, H_pad), jnp.float32).at[:, :, :H].set(
        b2.astype(jnp.float32))

    vmem_limit = _vmem_limit_bytes()
    n1_chunk = _pick_n1_chunk(H2_pad)

    w_itemsize = jnp.dtype(mxu_dtype).itemsize
    param_bytes = ((w1_p.size + w2_p.size) * w_itemsize
                   + (b1_p.size + b2_p.size) * 4)
    weights_resident = (not force_streaming) and (2 * param_bytes <= vmem_limit // 2)

    TM = _pick_tile_m(M_pad, H_pad, max(vmem_limit // 3, 2 << 20))
    grid_m = M_pad // TM

    flops = P * 4 * M_pad * H_pad * H2_pad
    act_bytes = 4 * 2 * M_pad * H_pad
    bytes_accessed = act_bytes + (param_bytes if weights_resident
                                  else grid_m * param_bytes)
    common = dict(
        out_shape=jax.ShapeDtypeStruct((M_pad, H_pad), jnp.float32),
        cost_estimate=pl.CostEstimate(flops=flops, transcendentals=0,
                                      bytes_accessed=bytes_accessed),
    )

    if weights_resident:
        kernel = functools.partial(_resident_kernel, num_pairs=P,
                                   n1_chunk=n1_chunk, mxu_dtype=mxu_dtype)
        y_pad = pl.pallas_call(
            kernel,
            grid=(grid_m,),
            in_specs=[
                pl.BlockSpec((TM, H_pad), lambda m: (m, 0)),
                pl.BlockSpec((P, H_pad, H2_pad), lambda m: (0, 0, 0)),
                pl.BlockSpec((P, 1, H2_pad), lambda m: (0, 0, 0)),
                pl.BlockSpec((P, H2_pad, H_pad), lambda m: (0, 0, 0)),
                pl.BlockSpec((P, 1, H_pad), lambda m: (0, 0, 0)),
            ],
            out_specs=pl.BlockSpec((TM, H_pad), lambda m: (m, 0)),
            compiler_params=pltpu.CompilerParams(
                dimension_semantics=("parallel",),
                vmem_limit_bytes=vmem_limit),
            **common,
        )(x_p, w1_p, b1_p, w2_p, b2_p)
    else:
        kernel = functools.partial(_stream_kernel, n1_chunk=n1_chunk,
                                   mxu_dtype=mxu_dtype)
        y_pad = pl.pallas_call(
            kernel,
            grid=(grid_m, P),
            in_specs=[
                pl.BlockSpec((TM, H_pad), lambda m, p: (m, 0)),
                pl.BlockSpec((None, H_pad, H2_pad), lambda m, p: (p, 0, 0)),
                pl.BlockSpec((None, 1, H2_pad), lambda m, p: (p, 0, 0)),
                pl.BlockSpec((None, H2_pad, H_pad), lambda m, p: (p, 0, 0)),
                pl.BlockSpec((None, 1, H_pad), lambda m, p: (p, 0, 0)),
            ],
            out_specs=pl.BlockSpec((TM, H_pad), lambda m, p: (m, 0)),
            compiler_params=pltpu.CompilerParams(
                dimension_semantics=("parallel", "arbitrary"),
                vmem_limit_bytes=vmem_limit),
            **common,
        )(x_p, w1_p, b1_p, w2_p, b2_p)

    return y_pad[:M, :H]


def _init_linear(key, in_features, out_features, dtype=jnp.float32):
    """torch.nn.Linear-style init (uniform +/- 1/sqrt(in)); weight returned
    already transposed to [in, out], bias as [1, out]."""
    kw, kb = jax.random.split(key)
    bound = 1.0 / math.sqrt(in_features)
    w = jax.random.uniform(kw, (in_features, out_features), dtype,
                           minval=-bound, maxval=bound)
    b = jax.random.uniform(kb, (1, out_features), dtype,
                           minval=-bound, maxval=bound)
    return w, b


def init_dummy_model_params(key, hidden_size, dtype=jnp.float32):
    """Stacked parameters for DummyModel's 7 (H->2H, 2H->H) pairs in forward
    order: mw1/mw2, then per block: bw1/bw2, experts.w1/experts.w2."""
    w1s, b1s, w2s, b2s = [], [], [], []
    for _ in range(7):
        key, k1, k2 = jax.random.split(key, 3)
        w1, b1 = _init_linear(k1, hidden_size, hidden_size * 2, dtype)
        w2, b2 = _init_linear(k2, hidden_size * 2, hidden_size, dtype)
        w1s.append(w1); b1s.append(b1); w2s.append(w2); b2s.append(b2)
    return {
        "w1": jnp.stack(w1s),   # [7, H, 2H]
        "b1": jnp.stack(b1s),   # [7, 1, 2H]
        "w2": jnp.stack(w2s),   # [7, 2H, H]
        "b2": jnp.stack(b2s),   # [7, 1, H]
    }


@functools.partial(jax.jit, static_argnames=("force_streaming",))
def dummy_model_forward(x, params, force_streaming=False):
    """x: [..., hidden].  Applies the 7 fused linear pairs."""
    orig_shape = x.shape
    x2d = x.reshape(-1, orig_shape[-1])
    y2d = fused_pairs(x2d, params["w1"], params["b1"],
                      params["w2"], params["b2"],
                      force_streaming=force_streaming)
    return y2d.reshape(orig_shape).astype(x.dtype)


def dummy_model_forward_ref(x, params):
    """Pure-JAX f32 reference."""
    x2d = x.reshape(-1, x.shape[-1]).astype(jnp.float32)
    for i in range(params["w1"].shape[0]):
        x2d = (x2d @ params["w1"][i] + params["b1"][i]) \
              @ params["w2"][i] + params["b2"][i]
    return x2d.reshape(x.shape)


def dummy_model_forward_ref_mixed(x, params, mxu_dtype=jnp.bfloat16):
    """Pure-JAX reference with the same mixed precision as the kernel
    (bf16 matmul operands, f32 accumulation, f32 bias adds)."""
    x2d = x.reshape(-1, x.shape[-1]).astype(jnp.float32)
    for i in range(params["w1"].shape[0]):
        h = jnp.dot(x2d.astype(mxu_dtype), params["w1"][i].astype(mxu_dtype),
                    preferred_element_type=jnp.float32) + params["b1"][i]
        x2d = jnp.dot(h.astype(mxu_dtype), params["w2"][i].astype(mxu_dtype),
                      preferred_element_type=jnp.float32) + params["b2"][i]
    return x2d.reshape(x.shape)


if __name__ == "__main__":
    key = jax.random.PRNGKey(0)
    batch, seq, hidden = 2, 8, 32

    kx, kp = jax.random.split(key)
    x = jax.random.normal(kx, (batch, seq, hidden), dtype=jnp.float32)
    params = init_dummy_model_params(kp, hidden, dtype=jnp.float32)

    # Default path: weights-resident mode (H small -> weights live in VMEM).
    out = jax.block_until_ready(dummy_model_forward(x, params))
    assert out.shape == (batch, seq, hidden)

    # Also exercise the large-H streaming path (pair axis on the grid).
    out_stream = jax.block_until_ready(
        dummy_model_forward(x, params, force_streaming=True))

    ref_f32 = dummy_model_forward_ref(x, params)
    ref_mix = dummy_model_forward_ref_mixed(x, params)

    assert jnp.allclose(out, out_stream, atol=1e-5, rtol=1e-5), \
        "resident vs streaming mismatch"
    assert jnp.allclose(out, ref_mix, atol=1e-2, rtol=1e-2), \
        "mismatch vs mixed-precision reference"
    assert jnp.allclose(out, ref_f32, atol=5e-2, rtol=5e-2), \
        "mismatch vs f32 reference"

    print("KERNEL_OK")
</pallas_src>

<mosaic_0001>
module attributes {stable_mosaic.version = 11 : i64} {
  func.func @_resident_kernel(%arg0: i32, %arg1: memref<8x128xf32, #tpu.memory_space<vmem>>, %arg2: memref<7x128x256xbf16, #tpu.memory_space<vmem>>, %arg3: memref<7x1x256xf32, #tpu.memory_space<vmem>>, %arg4: memref<7x256x128xbf16, #tpu.memory_space<vmem>>, %arg5: memref<7x1x128xf32, #tpu.memory_space<vmem>>, %arg6: memref<8x128xf32, #tpu.memory_space<vmem>>) attributes {dimension_semantics = [#tpu.dimension_semantics<parallel>], iteration_bounds = array<i64: 2>, scalar_prefetch = 0 : i64, scratch_operands = 0 : i64, tpu.core_type = #tpu.core_type<tc>, window_params = [{transform_indices = @transform_0, window_bounds = array<i64: 8, 128>}, {pipeline_mode = #tpu.pipeline_mode<synchronous>, transform_indices = @transform_1, window_bounds = array<i64: 7, 128, 256>}, {pipeline_mode = #tpu.pipeline_mode<synchronous>, transform_indices = @transform_2, window_bounds = array<i64: 7, 1, 256>}, {pipeline_mode = #tpu.pipeline_mode<synchronous>, transform_indices = @transform_3, window_bounds = array<i64: 7, 256, 128>}, {pipeline_mode = #tpu.pipeline_mode<synchronous>, transform_indices = @transform_4, window_bounds = array<i64: 7, 1, 128>}, {transform_indices = @transform_5, window_bounds = array<i64: 8, 128>}]} {
    %c0 = arith.constant 0 : index
    %c0_0 = arith.constant 0 : index
    %0 = vector.load %arg1[%c0, %c0_0] : memref<8x128xf32, #tpu.memory_space<vmem>>, vector<8x128xf32>
    %1 = arith.truncf %0 : vector<8x128xf32> to vector<8x128xbf16>
    %c0_i32 = arith.constant 0 : i32
    %c0_i32_1 = arith.constant 0 : i32
    %c0_i32_2 = arith.constant 0 : i32
    %2 = tpu.memref_slice %arg2[%c0_i32, %c0_i32_1, %c0_i32_2] : memref<7x128x256xbf16, #tpu.memory_space<vmem>> -> memref<1x128x256xbf16, #tpu.memory_space<vmem>>
    %3 = tpu.memref_squeeze %2 : memref<1x128x256xbf16, #tpu.memory_space<vmem>> -> memref<128x256xbf16, #tpu.memory_space<vmem>>
    %c0_3 = arith.constant 0 : index
    %c0_4 = arith.constant 0 : index
    %4 = vector.load %3[%c0_3, %c0_4] : memref<128x256xbf16, #tpu.memory_space<vmem>>, vector<128x256xbf16>
    %cst = arith.constant dense<0.000000e+00> : vector<8x256xf32>
    %5 = tpu.matmul %1, %4, %cst {dimension_numbers = #tpu.dot_dimension_numbers<[1], [0], [0], [1], [0, 0, 1, 1], [], []>} : vector<8x128xbf16>, vector<128x256xbf16>, vector<8x256xf32> -> vector<8x256xf32>
    %c0_i32_5 = arith.constant 0 : i32
    %c0_i32_6 = arith.constant 0 : i32
    %c0_i32_7 = arith.constant 0 : i32
    %6 = tpu.memref_slice %arg3[%c0_i32_5, %c0_i32_6, %c0_i32_7] : memref<7x1x256xf32, #tpu.memory_space<vmem>> -> memref<1x1x256xf32, #tpu.memory_space<vmem>>
    %7 = tpu.memref_squeeze %6 : memref<1x1x256xf32, #tpu.memory_space<vmem>> -> memref<1x256xf32, #tpu.memory_space<vmem>>
    %c0_8 = arith.constant 0 : index
    %c0_9 = arith.constant 0 : index
    %8 = vector.load %7[%c0_8, %c0_9] : memref<1x256xf32, #tpu.memory_space<vmem>>, vector<1x256xf32>
    %9 = vector.broadcast %8 : vector<1x256xf32> to vector<8x256xf32>
    %10 = arith.addf %5, %9 : vector<8x256xf32>
    %11 = arith.truncf %10 : vector<8x256xf32> to vector<8x256xbf16>
    %c0_i32_10 = arith.constant 0 : i32
    %c0_i32_11 = arith.constant 0 : i32
    %c0_i32_12 = arith.constant 0 : i32
    %12 = tpu.memref_slice %arg4[%c0_i32_10, %c0_i32_11, %c0_i32_12] : memref<7x256x128xbf16, #tpu.memory_space<vmem>> -> memref<1x256x128xbf16, #tpu.memory_space<vmem>>
    %13 = tpu.memref_squeeze %12 : memref<1x256x128xbf16, #tpu.memory_space<vmem>> -> memref<256x128xbf16, #tpu.memory_space<vmem>>
    %c0_13 = arith.constant 0 : index
    %c0_14 = arith.constant 0 : index
    %14 = vector.load %13[%c0_13, %c0_14] : memref<256x128xbf16, #tpu.memory_space<vmem>>, vector<256x128xbf16>
    %cst_15 = arith.constant dense<0.000000e+00> : vector<8x128xf32>
    %15 = tpu.matmul %11, %14, %cst_15 {dimension_numbers = #tpu.dot_dimension_numbers<[1], [0], [0], [1], [0, 0, 1, 1], [], []>} : vector<8x256xbf16>, vector<256x128xbf16>, vector<8x128xf32> -> vector<8x128xf32>
    %c0_16 = arith.constant 0 : index
    %c0_17 = arith.constant 0 : index
    %c0_18 = arith.constant 0 : index
    %16 = vector.load %arg5[%c0_16, %c0_17, %c0_18] : memref<7x1x128xf32, #tpu.memory_space<vmem>>, vector<1x1x128xf32>
    %17 = vector.shape_cast %16 : vector<1x1x128xf32> to vector<1x128xf32>
    %18 = vector.broadcast %17 : vector<1x128xf32> to vector<8x128xf32>
    %19 = arith.addf %15, %18 : vector<8x128xf32>
    %20 = arith.truncf %19 : vector<8x128xf32> to vector<8x128xbf16>
    %c1_i32 = arith.constant 1 : i32
    %c0_i32_19 = arith.constant 0 : i32
    %c0_i32_20 = arith.constant 0 : i32
    %21 = tpu.memref_slice %arg2[%c1_i32, %c0_i32_19, %c0_i32_20] : memref<7x128x256xbf16, #tpu.memory_space<vmem>> -> memref<1x128x256xbf16, #tpu.memory_space<vmem>>
    %22 = tpu.memref_squeeze %21 : memref<1x128x256xbf16, #tpu.memory_space<vmem>> -> memref<128x256xbf16, #tpu.memory_space<vmem>>
    %c0_21 = arith.constant 0 : index
    %c0_22 = arith.constant 0 : index
    %23 = vector.load %22[%c0_21, %c0_22] : memref<128x256xbf16, #tpu.memory_space<vmem>>, vector<128x256xbf16>
    %cst_23 = arith.constant dense<0.000000e+00> : vector<8x256xf32>
    %24 = tpu.matmul %20, %23, %cst_23 {dimension_numbers = #tpu.dot_dimension_numbers<[1], [0], [0], [1], [0, 0, 1, 1], [], []>} : vector<8x128xbf16>, vector<128x256xbf16>, vector<8x256xf32> -> vector<8x256xf32>
    %c1_i32_24 = arith.constant 1 : i32
    %c0_i32_25 = arith.constant 0 : i32
    %c0_i32_26 = arith.constant 0 : i32
    %25 = tpu.memref_slice %arg3[%c1_i32_24, %c0_i32_25, %c0_i32_26] : memref<7x1x256xf32, #tpu.memory_space<vmem>> -> memref<1x1x256xf32, #tpu.memory_space<vmem>>
    %26 = tpu.memref_squeeze %25 : memref<1x1x256xf32, #tpu.memory_space<vmem>> -> memref<1x256xf32, #tpu.memory_space<vmem>>
    %c0_27 = arith.constant 0 : index
    %c0_28 = arith.constant 0 : index
    %27 = vector.load %26[%c0_27, %c0_28] : memref<1x256xf32, #tpu.memory_space<vmem>>, vector<1x256xf32>
    %28 = vector.broadcast %27 : vector<1x256xf32> to vector<8x256xf32>
    %29 = arith.addf %24, %28 : vector<8x256xf32>
    %30 = arith.truncf %29 : vector<8x256xf32> to vector<8x256xbf16>
    %c1_i32_29 = arith.constant 1 : i32
    %c0_i32_30 = arith.constant 0 : i32
    %c0_i32_31 = arith.constant 0 : i32
    %31 = tpu.memref_slice %arg4[%c1_i32_29, %c0_i32_30, %c0_i32_31] : memref<7x256x128xbf16, #tpu.memory_space<vmem>> -> memref<1x256x128xbf16, #tpu.memory_space<vmem>>
    %32 = tpu.memref_squeeze %31 : memref<1x256x128xbf16, #tpu.memory_space<vmem>> -> memref<256x128xbf16, #tpu.memory_space<vmem>>
    %c0_32 = arith.constant 0 : index
    %c0_33 = arith.constant 0 : index
    %33 = vector.load %32[%c0_32, %c0_33] : memref<256x128xbf16, #tpu.memory_space<vmem>>, vector<256x128xbf16>
    %cst_34 = arith.constant dense<0.000000e+00> : vector<8x128xf32>
    %34 = tpu.matmul %30, %33, %cst_34 {dimension_numbers = #tpu.dot_dimension_numbers<[1], [0], [0], [1], [0, 0, 1, 1], [], []>} : vector<8x256xbf16>, vector<256x128xbf16>, vector<8x128xf32> -> vector<8x128xf32>
    %c1 = arith.constant 1 : index
    %c0_35 = arith.constant 0 : index
    %c0_36 = arith.constant 0 : index
    %35 = vector.load %arg5[%c1, %c0_35, %c0_36] : memref<7x1x128xf32, #tpu.memory_space<vmem>>, vector<1x1x128xf32>
    %36 = vector.shape_cast %35 : vector<1x1x128xf32> to vector<1x128xf32>
    %37 = vector.broadcast %36 : vector<1x128xf32> to vector<8x128xf32>
    %38 = arith.addf %34, %37 : vector<8x128xf32>
    %39 = arith.truncf %38 : vector<8x128xf32> to vector<8x128xbf16>
    %c2_i32 = arith.constant 2 : i32
    %c0_i32_37 = arith.constant 0 : i32
    %c0_i32_38 = arith.constant 0 : i32
    %40 = tpu.memref_slice %arg2[%c2_i32, %c0_i32_37, %c0_i32_38] : memref<7x128x256xbf16, #tpu.memory_space<vmem>> -> memref<1x128x256xbf16, #tpu.memory_space<vmem>>
    %41 = tpu.memref_squeeze %40 : memref<1x128x256xbf16, #tpu.memory_space<vmem>> -> memref<128x256xbf16, #tpu.memory_space<vmem>>
    %c0_39 = arith.constant 0 : index
    %c0_40 = arith.constant 0 : index
    %42 = vector.load %41[%c0_39, %c0_40] : memref<128x256xbf16, #tpu.memory_space<vmem>>, vector<128x256xbf16>
    %cst_41 = arith.constant dense<0.000000e+00> : vector<8x256xf32>
    %43 = tpu.matmul %39, %42, %cst_41 {dimension_numbers = #tpu.dot_dimension_numbers<[1], [0], [0], [1], [0, 0, 1, 1], [], []>} : vector<8x128xbf16>, vector<128x256xbf16>, vector<8x256xf32> -> vector<8x256xf32>
    %c2_i32_42 = arith.constant 2 : i32
    %c0_i32_43 = arith.constant 0 : i32
    %c0_i32_44 = arith.constant 0 : i32
    %44 = tpu.memref_slice %arg3[%c2_i32_42, %c0_i32_43, %c0_i32_44] : memref<7x1x256xf32, #tpu.memory_space<vmem>> -> memref<1x1x256xf32, #tpu.memory_space<vmem>>
    %45 = tpu.memref_squeeze %44 : memref<1x1x256xf32, #tpu.memory_space<vmem>> -> memref<1x256xf32, #tpu.memory_space<vmem>>
    %c0_45 = arith.constant 0 : index
    %c0_46 = arith.constant 0 : index
    %46 = vector.load %45[%c0_45, %c0_46] : memref<1x256xf32, #tpu.memory_space<vmem>>, vector<1x256xf32>
    %47 = vector.broadcast %46 : vector<1x256xf32> to vector<8x256xf32>
    %48 = arith.addf %43, %47 : vector<8x256xf32>
    %49 = arith.truncf %48 : vector<8x256xf32> to vector<8x256xbf16>
    %c2_i32_47 = arith.constant 2 : i32
    %c0_i32_48 = arith.constant 0 : i32
    %c0_i32_49 = arith.constant 0 : i32
    %50 = tpu.memref_slice %arg4[%c2_i32_47, %c0_i32_48, %c0_i32_49] : memref<7x256x128xbf16, #tpu.memory_space<vmem>> -> memref<1x256x128xbf16, #tpu.memory_space<vmem>>
    %51 = tpu.memref_squeeze %50 : memref<1x256x128xbf16, #tpu.memory_space<vmem>> -> memref<256x128xbf16, #tpu.memory_space<vmem>>
    %c0_50 = arith.constant 0 : index
    %c0_51 = arith.constant 0 : index
    %52 = vector.load %51[%c0_50, %c0_51] : memref<256x128xbf16, #tpu.memory_space<vmem>>, vector<256x128xbf16>
    %cst_52 = arith.constant dense<0.000000e+00> : vector<8x128xf32>
    %53 = tpu.matmul %49, %52, %cst_52 {dimension_numbers = #tpu.dot_dimension_numbers<[1], [0], [0], [1], [0, 0, 1, 1], [], []>} : vector<8x256xbf16>, vector<256x128xbf16>, vector<8x128xf32> -> vector<8x128xf32>
    %c2 = arith.constant 2 : index
    %c0_53 = arith.constant 0 : index
    %c0_54 = arith.constant 0 : index
    %54 = vector.load %arg5[%c2, %c0_53, %c0_54] : memref<7x1x128xf32, #tpu.memory_space<vmem>>, vector<1x1x128xf32>
    %55 = vector.shape_cast %54 : vector<1x1x128xf32> to vector<1x128xf32>
    %56 = vector.broadcast %55 : vector<1x128xf32> to vector<8x128xf32>
    %57 = arith.addf %53, %56 : vector<8x128xf32>
    %58 = arith.truncf %57 : vector<8x128xf32> to vector<8x128xbf16>
    %c3_i32 = arith.constant 3 : i32
    %c0_i32_55 = arith.constant 0 : i32
    %c0_i32_56 = arith.constant 0 : i32
    %59 = tpu.memref_slice %arg2[%c3_i32, %c0_i32_55, %c0_i32_56] : memref<7x128x256xbf16, #tpu.memory_space<vmem>> -> memref<1x128x256xbf16, #tpu.memory_space<vmem>>
    %60 = tpu.memref_squeeze %59 : memref<1x128x256xbf16, #tpu.memory_space<vmem>> -> memref<128x256xbf16, #tpu.memory_space<vmem>>
    %c0_57 = arith.constant 0 : index
    %c0_58 = arith.constant 0 : index
    %61 = vector.load %60[%c0_57, %c0_58] : memref<128x256xbf16, #tpu.memory_space<vmem>>, vector<128x256xbf16>
    %cst_59 = arith.constant dense<0.000000e+00> : vector<8x256xf32>
    %62 = tpu.matmul %58, %61, %cst_59 {dimension_numbers = #tpu.dot_dimension_numbers<[1], [0], [0], [1], [0, 0, 1, 1], [], []>} : vector<8x128xbf16>, vector<128x256xbf16>, vector<8x256xf32> -> vector<8x256xf32>
    %c3_i32_60 = arith.constant 3 : i32
    %c0_i32_61 = arith.constant 0 : i32
    %c0_i32_62 = arith.constant 0 : i32
    %63 = tpu.memref_slice %arg3[%c3_i32_60, %c0_i32_61, %c0_i32_62] : memref<7x1x256xf32, #tpu.memory_space<vmem>> -> memref<1x1x256xf32, #tpu.memory_space<vmem>>
    %64 = tpu.memref_squeeze %63 : memref<1x1x256xf32, #tpu.memory_space<vmem>> -> memref<1x256xf32, #tpu.memory_space<vmem>>
    %c0_63 = arith.constant 0 : index
    %c0_64 = arith.constant 0 : index
    %65 = vector.load %64[%c0_63, %c0_64] : memref<1x256xf32, #tpu.memory_space<vmem>>, vector<1x256xf32>
    %66 = vector.broadcast %65 : vector<1x256xf32> to vector<8x256xf32>
    %67 = arith.addf %62, %66 : vector<8x256xf32>
    %68 = arith.truncf %67 : vector<8x256xf32> to vector<8x256xbf16>
    %c3_i32_65 = arith.constant 3 : i32
    %c0_i32_66 = arith.constant 0 : i32
    %c0_i32_67 = arith.constant 0 : i32
    %69 = tpu.memref_slice %arg4[%c3_i32_65, %c0_i32_66, %c0_i32_67] : memref<7x256x128xbf16, #tpu.memory_space<vmem>> -> memref<1x256x128xbf16, #tpu.memory_space<vmem>>
    %70 = tpu.memref_squeeze %69 : memref<1x256x128xbf16, #tpu.memory_space<vmem>> -> memref<256x128xbf16, #tpu.memory_space<vmem>>
    %c0_68 = arith.constant 0 : index
    %c0_69 = arith.constant 0 : index
    %71 = vector.load %70[%c0_68, %c0_69] : memref<256x128xbf16, #tpu.memory_space<vmem>>, vector<256x128xbf16>
    %cst_70 = arith.constant dense<0.000000e+00> : vector<8x128xf32>
    %72 = tpu.matmul %68, %71, %cst_70 {dimension_numbers = #tpu.dot_dimension_numbers<[1], [0], [0], [1], [0, 0, 1, 1], [], []>} : vector<8x256xbf16>, vector<256x128xbf16>, vector<8x128xf32> -> vector<8x128xf32>
    %c3 = arith.constant 3 : index
    %c0_71 = arith.constant 0 : index
    %c0_72 = arith.constant 0 : index
    %73 = vector.load %arg5[%c3, %c0_71, %c0_72] : memref<7x1x128xf32, #tpu.memory_space<vmem>>, vector<1x1x128xf32>
    %74 = vector.shape_cast %73 : vector<1x1x128xf32> to vector<1x128xf32>
    %75 = vector.broadcast %74 : vector<1x128xf32> to vector<8x128xf32>
    %76 = arith.addf %72, %75 : vector<8x128xf32>
    %77 = arith.truncf %76 : vector<8x128xf32> to vector<8x128xbf16>
    %c4_i32 = arith.constant 4 : i32
    %c0_i32_73 = arith.constant 0 : i32
    %c0_i32_74 = arith.constant 0 : i32
    %78 = tpu.memref_slice %arg2[%c4_i32, %c0_i32_73, %c0_i32_74] : memref<7x128x256xbf16, #tpu.memory_space<vmem>> -> memref<1x128x256xbf16, #tpu.memory_space<vmem>>
    %79 = tpu.memref_squeeze %78 : memref<1x128x256xbf16, #tpu.memory_space<vmem>> -> memref<128x256xbf16, #tpu.memory_space<vmem>>
    %c0_75 = arith.constant 0 : index
    %c0_76 = arith.constant 0 : index
    %80 = vector.load %79[%c0_75, %c0_76] : memref<128x256xbf16, #tpu.memory_space<vmem>>, vector<128x256xbf16>
    %cst_77 = arith.constant dense<0.000000e+00> : vector<8x256xf32>
    %81 = tpu.matmul %77, %80, %cst_77 {dimension_numbers = #tpu.dot_dimension_numbers<[1], [0], [0], [1], [0, 0, 1, 1], [], []>} : vector<8x128xbf16>, vector<128x256xbf16>, vector<8x256xf32> -> vector<8x256xf32>
    %c4_i32_78 = arith.constant 4 : i32
    %c0_i32_79 = arith.constant 0 : i32
    %c0_i32_80 = arith.constant 0 : i32
    %82 = tpu.memref_slice %arg3[%c4_i32_78, %c0_i32_79, %c0_i32_80] : memref<7x1x256xf32, #tpu.memory_space<vmem>> -> memref<1x1x256xf32, #tpu.memory_space<vmem>>
    %83 = tpu.memref_squeeze %82 : memref<1x1x256xf32, #tpu.memory_space<vmem>> -> memref<1x256xf32, #tpu.memory_space<vmem>>
    %c0_81 = arith.constant 0 : index
    %c0_82 = arith.constant 0 : index
    %84 = vector.load %83[%c0_81, %c0_82] : memref<1x256xf32, #tpu.memory_space<vmem>>, vector<1x256xf32>
    %85 = vector.broadcast %84 : vector<1x256xf32> to vector<8x256xf32>
    %86 = arith.addf %81, %85 : vector<8x256xf32>
    %87 = arith.truncf %86 : vector<8x256xf32> to vector<8x256xbf16>
    %c4_i32_83 = arith.constant 4 : i32
    %c0_i32_84 = arith.constant 0 : i32
    %c0_i32_85 = arith.constant 0 : i32
    %88 = tpu.memref_slice %arg4[%c4_i32_83, %c0_i32_84, %c0_i32_85] : memref<7x256x128xbf16, #tpu.memory_space<vmem>> -> memref<1x256x128xbf16, #tpu.memory_space<vmem>>
    %89 = tpu.memref_squeeze %88 : memref<1x256x128xbf16, #tpu.memory_space<vmem>> -> memref<256x128xbf16, #tpu.memory_space<vmem>>
    %c0_86 = arith.constant 0 : index
    %c0_87 = arith.constant 0 : index
    %90 = vector.load %89[%c0_86, %c0_87] : memref<256x128xbf16, #tpu.memory_space<vmem>>, vector<256x128xbf16>
    %cst_88 = arith.constant dense<0.000000e+00> : vector<8x128xf32>
    %91 = tpu.matmul %87, %90, %cst_88 {dimension_numbers = #tpu.dot_dimension_numbers<[1], [0], [0], [1], [0, 0, 1, 1], [], []>} : vector<8x256xbf16>, vector<256x128xbf16>, vector<8x128xf32> -> vector<8x128xf32>
    %c4 = arith.constant 4 : index
    %c0_89 = arith.constant 0 : index
    %c0_90 = arith.constant 0 : index
    %92 = vector.load %arg5[%c4, %c0_89, %c0_90] : memref<7x1x128xf32, #tpu.memory_space<vmem>>, vector<1x1x128xf32>
    %93 = vector.shape_cast %92 : vector<1x1x128xf32> to vector<1x128xf32>
    %94 = vector.broadcast %93 : vector<1x128xf32> to vector<8x128xf32>
    %95 = arith.addf %91, %94 : vector<8x128xf32>
    %96 = arith.truncf %95 : vector<8x128xf32> to vector<8x128xbf16>
    %c5_i32 = arith.constant 5 : i32
    %c0_i32_91 = arith.constant 0 : i32
    %c0_i32_92 = arith.constant 0 : i32
    %97 = tpu.memref_slice %arg2[%c5_i32, %c0_i32_91, %c0_i32_92] : memref<7x128x256xbf16, #tpu.memory_space<vmem>> -> memref<1x128x256xbf16, #tpu.memory_space<vmem>>
    %98 = tpu.memref_squeeze %97 : memref<1x128x256xbf16, #tpu.memory_space<vmem>> -> memref<128x256xbf16, #tpu.memory_space<vmem>>
    %c0_93 = arith.constant 0 : index
    %c0_94 = arith.constant 0 : index
    %99 = vector.load %98[%c0_93, %c0_94] : memref<128x256xbf16, #tpu.memory_space<vmem>>, vector<128x256xbf16>
    %cst_95 = arith.constant dense<0.000000e+00> : vector<8x256xf32>
    %100 = tpu.matmul %96, %99, %cst_95 {dimension_numbers = #tpu.dot_dimension_numbers<[1], [0], [0], [1], [0, 0, 1, 1], [], []>} : vector<8x128xbf16>, vector<128x256xbf16>, vector<8x256xf32> -> vector<8x256xf32>
    %c5_i32_96 = arith.constant 5 : i32
    %c0_i32_97 = arith.constant 0 : i32
    %c0_i32_98 = arith.constant 0 : i32
    %101 = tpu.memref_slice %arg3[%c5_i32_96, %c0_i32_97, %c0_i32_98] : memref<7x1x256xf32, #tpu.memory_space<vmem>> -> memref<1x1x256xf32, #tpu.memory_space<vmem>>
    %102 = tpu.memref_squeeze %101 : memref<1x1x256xf32, #tpu.memory_space<vmem>> -> memref<1x256xf32, #tpu.memory_space<vmem>>
    %c0_99 = arith.constant 0 : index
    %c0_100 = arith.constant 0 : index
    %103 = vector.load %102[%c0_99, %c0_100] : memref<1x256xf32, #tpu.memory_space<vmem>>, vector<1x256xf32>
    %104 = vector.broadcast %103 : vector<1x256xf32> to vector<8x256xf32>
    %105 = arith.addf %100, %104 : vector<8x256xf32>
    %106 = arith.truncf %105 : vector<8x256xf32> to vector<8x256xbf16>
    %c5_i32_101 = arith.constant 5 : i32
    %c0_i32_102 = arith.constant 0 : i32
    %c0_i32_103 = arith.constant 0 : i32
    %107 = tpu.memref_slice %arg4[%c5_i32_101, %c0_i32_102, %c0_i32_103] : memref<7x256x128xbf16, #tpu.memory_space<vmem>> -> memref<1x256x128xbf16, #tpu.memory_space<vmem>>
    %108 = tpu.memref_squeeze %107 : memref<1x256x128xbf16, #tpu.memory_space<vmem>> -> memref<256x128xbf16, #tpu.memory_space<vmem>>
    %c0_104 = arith.constant 0 : index
    %c0_105 = arith.constant 0 : index
    %109 = vector.load %108[%c0_104, %c0_105] : memref<256x128xbf16, #tpu.memory_space<vmem>>, vector<256x128xbf16>
    %cst_106 = arith.constant dense<0.000000e+00> : vector<8x128xf32>
    %110 = tpu.matmul %106, %109, %cst_106 {dimension_numbers = #tpu.dot_dimension_numbers<[1], [0], [0], [1], [0, 0, 1, 1], [], []>} : vector<8x256xbf16>, vector<256x128xbf16>, vector<8x128xf32> -> vector<8x128xf32>
    %c5 = arith.constant 5 : index
    %c0_107 = arith.constant 0 : index
    %c0_108 = arith.constant 0 : index
    %111 = vector.load %arg5[%c5, %c0_107, %c0_108] : memref<7x1x128xf32, #tpu.memory_space<vmem>>, vector<1x1x128xf32>
    %112 = vector.shape_cast %111 : vector<1x1x128xf32> to vector<1x128xf32>
    %113 = vector.broadcast %112 : vector<1x128xf32> to vector<8x128xf32>
    %114 = arith.addf %110, %113 : vector<8x128xf32>
    %115 = arith.truncf %114 : vector<8x128xf32> to vector<8x128xbf16>
    %c6_i32 = arith.constant 6 : i32
    %c0_i32_109 = arith.constant 0 : i32
    %c0_i32_110 = arith.constant 0 : i32
    %116 = tpu.memref_slice %arg2[%c6_i32, %c0_i32_109, %c0_i32_110] : memref<7x128x256xbf16, #tpu.memory_space<vmem>> -> memref<1x128x256xbf16, #tpu.memory_space<vmem>>
    %117 = tpu.memref_squeeze %116 : memref<1x128x256xbf16, #tpu.memory_space<vmem>> -> memref<128x256xbf16, #tpu.memory_space<vmem>>
    %c0_111 = arith.constant 0 : index
    %c0_112 = arith.constant 0 : index
    %118 = vector.load %117[%c0_111, %c0_112] : memref<128x256xbf16, #tpu.memory_space<vmem>>, vector<128x256xbf16>
    %cst_113 = arith.constant dense<0.000000e+00> : vector<8x256xf32>
    %119 = tpu.matmul %115, %118, %cst_113 {dimension_numbers = #tpu.dot_dimension_numbers<[1], [0], [0], [1], [0, 0, 1, 1], [], []>} : vector<8x128xbf16>, vector<128x256xbf16>, vector<8x256xf32> -> vector<8x256xf32>
    %c6_i32_114 = arith.constant 6 : i32
    %c0_i32_115 = arith.constant 0 : i32
    %c0_i32_116 = arith.constant 0 : i32
    %120 = tpu.memref_slice %arg3[%c6_i32_114, %c0_i32_115, %c0_i32_116] : memref<7x1x256xf32, #tpu.memory_space<vmem>> -> memref<1x1x256xf32, #tpu.memory_space<vmem>>
    %121 = tpu.memref_squeeze %120 : memref<1x1x256xf32, #tpu.memory_space<vmem>> -> memref<1x256xf32, #tpu.memory_space<vmem>>
    %c0_117 = arith.constant 0 : index
    %c0_118 = arith.constant 0 : index
    %122 = vector.load %121[%c0_117, %c0_118] : memref<1x256xf32, #tpu.memory_space<vmem>>, vector<1x256xf32>
    %123 = vector.broadcast %122 : vector<1x256xf32> to vector<8x256xf32>
    %124 = arith.addf %119, %123 : vector<8x256xf32>
    %125 = arith.truncf %124 : vector<8x256xf32> to vector<8x256xbf16>
    %c6_i32_119 = arith.constant 6 : i32
    %c0_i32_120 = arith.constant 0 : i32
    %c0_i32_121 = arith.constant 0 : i32
    %126 = tpu.memref_slice %arg4[%c6_i32_119, %c0_i32_120, %c0_i32_121] : memref<7x256x128xbf16, #tpu.memory_space<vmem>> -> memref<1x256x128xbf16, #tpu.memory_space<vmem>>
    %127 = tpu.memref_squeeze %126 : memref<1x256x128xbf16, #tpu.memory_space<vmem>> -> memref<256x128xbf16, #tpu.memory_space<vmem>>
    %c0_122 = arith.constant 0 : index
    %c0_123 = arith.constant 0 : index
    %128 = vector.load %127[%c0_122, %c0_123] : memref<256x128xbf16, #tpu.memory_space<vmem>>, vector<256x128xbf16>
    %cst_124 = arith.constant dense<0.000000e+00> : vector<8x128xf32>
    %129 = tpu.matmul %125, %128, %cst_124 {dimension_numbers = #tpu.dot_dimension_numbers<[1], [0], [0], [1], [0, 0, 1, 1], [], []>} : vector<8x256xbf16>, vector<256x128xbf16>, vector<8x128xf32> -> vector<8x128xf32>
    %c6 = arith.constant 6 : index
    %c0_125 = arith.constant 0 : index
    %c0_126 = arith.constant 0 : index
    %130 = vector.load %arg5[%c6, %c0_125, %c0_126] : memref<7x1x128xf32, #tpu.memory_space<vmem>>, vector<1x1x128xf32>
    %131 = vector.shape_cast %130 : vector<1x1x128xf32> to vector<1x128xf32>
    %132 = vector.broadcast %131 : vector<1x128xf32> to vector<8x128xf32>
    %133 = arith.addf %129, %132 : vector<8x128xf32>
    %c0_127 = arith.constant 0 : index
    %c0_128 = arith.constant 0 : index
    %134 = vector.load %arg6[%c0_127, %c0_128] : memref<8x128xf32, #tpu.memory_space<vmem>>, vector<8x128xf32>
    tpu.vector_store %arg6[%c0_127, %c0_128], %133 {strides = array<i32>} : memref<8x128xf32, #tpu.memory_space<vmem>>, vector<8x128xf32>,
    return
  }
  func.func @transform_0(%arg0: i32) -> (i32, i32) {
    %c0_i32 = arith.constant 0 : i32
    %c0_i32_0 = arith.constant 0 : i32
    return %arg0, %c0_i32 : i32, i32
  }
  func.func @transform_1(%arg0: i32) -> (i32, i32, i32) {
    %c0_i32 = arith.constant 0 : i32
    %c0_i32_0 = arith.constant 0 : i32
    %c0_i32_1 = arith.constant 0 : i32
    %c0_i32_2 = arith.constant 0 : i32
    return %c0_i32, %c0_i32_0, %c0_i32_1 : i32, i32, i32
  }
  func.func @transform_2(%arg0: i32) -> (i32, i32, i32) {
    %c0_i32 = arith.constant 0 : i32
    %c0_i32_0 = arith.constant 0 : i32
    %c0_i32_1 = arith.constant 0 : i32
    %c0_i32_2 = arith.constant 0 : i32
    return %c0_i32, %c0_i32_0, %c0_i32_1 : i32, i32, i32
  }
  func.func @transform_3(%arg0: i32) -> (i32, i32, i32) {
    %c0_i32 = arith.constant 0 : i32
    %c0_i32_0 = arith.constant 0 : i32
    %c0_i32_1 = arith.constant 0 : i32
    %c0_i32_2 = arith.constant 0 : i32
    return %c0_i32, %c0_i32_0, %c0_i32_1 : i32, i32, i32
  }
  func.func @transform_4(%arg0: i32) -> (i32, i32, i32) {
    %c0_i32 = arith.constant 0 : i32
    %c0_i32_0 = arith.constant 0 : i32
    %c0_i32_1 = arith.constant 0 : i32
    %c0_i32_2 = arith.constant 0 : i32
    return %c0_i32, %c0_i32_0, %c0_i32_1 : i32, i32, i32
  }
  func.func @transform_5(%arg0: i32) -> (i32, i32) {
    %c0_i32 = arith.constant 0 : i32
    %c0_i32_0 = arith.constant 0 : i32
    return %arg0, %c0_i32 : i32, i32
  }
}

</mosaic_0001>

<bundles_post_ra>
// kernel: dummy_model_forward.1
= control target key start
LH: loop header
LB: loop body
LE: loop exit
PB: predicated region body
PF: predicated region fallthrough
CT: control target
= control target key end

     0   :  { %s3611_s18 = smov 0   ;;  %s4378_s0 = inlined_call_operand.vmem [shape: f32[16,128], index: 0, kind: input, shape index: {}]   ;;  %s4379_s1 = inlined_call_operand.vmem [shape: bf16[7,128,256], index: 1, kind: input, shape index: {}]   ;;  %s4380_s2 = inlined_call_operand.vmem [shape: f32[7,1,256], index: 2, kind: input, shape index: {}]   ;;  %s4381_s3 = inlined_call_operand.vmem [shape: bf16[7,256,128], index: 3, kind: input, shape index: {}]   ;;  %s4382_s4 = inlined_call_operand.vmem [shape: f32[7,1,128], index: 4, kind: input, shape index: {}]   ;;  %s4383_s5 = inlined_call_operand.vmem [shape: f32[16,128], index: 5, kind: output, shape index: {}]  }
   0x1 LB: > { %s2589_s19 = sadd.s32 4294967295, %s3578_s18   ;;  %p2593_p0 = scmp.ge.s32.totalorder %s3578_s18, 1  ;;  %s3578_s18 = sphi %s3611_s18, %s15_s18  }
   0x2   : > { %p186_p1 = scmp.lt.s32.totalorder %s3578_s18, 3 }
   0x4   : > { %p187_p2 = pnand %p2593_p0, %p186_p1 }
   0x5   : > { %v3292_v0 = vld [vmem:[%s4379_s1 + $0x4] ss:$8 sps:$4 sm:$0xff] (!%p187_p2)   ;;  %v3294_v1 = vld [vmem:[%s4379_s1] ss:$8 sps:$4 sm:$0xff] (!%p187_p2)   ;;  %v3580_v2 = vmov (!%p187_p2), 0   ;;  %p212_p3 = scmp.lt.s32.totalorder (!%p187_p2), %s2589_s19, 1  ;;  %v241_v47 = vlaneseq (!%p187_p2) }
   0x6   : > { %190 = sbr.rel (%p187_p2) target bundleno = 3096 (0xc18), region = 40  ;;  %363 = vmatprep.mubr.bf16.mxu0 (!%p187_p2), %v3580_v2  ;;  %331 = vmatprep.subr.bf16.mxu0 (!%p187_p2), %v3292_v0  ;;  %v3295_v3 = vld [vmem:[%s4379_s1 + $0x14] ss:$8 sps:$4 sm:$0xff] (!%p187_p2)   ;;  %v3297_v4 = vld [vmem:[%s4379_s1 + $0x10] ss:$8 sps:$4 sm:$0xff] (!%p187_p2)   ;;  %v3316_v10 = vld [vmem:[%s4381_s3 + $0x40] sm:$0xff] (!%p187_p2)  }
   0x7   : > { %332 = vmatpush1.bf16.msra.mxu0 (!%p187_p2), %v3294_v1  ;;  %v3298_v5 = vld [vmem:[%s4379_s1 + $0x24] ss:$8 sps:$4 sm:$0xff] (!%p187_p2)   ;;  %v3300_v6 = vld [vmem:[%s4379_s1 + $0x20] ss:$8 sps:$4 sm:$0xff] (!%p187_p2)   ;;  %v3301_v7 = vld [vmem:[%s4379_s1 + $0x34] ss:$8 sps:$4 sm:$0xff] (!%p187_p2)   ;;  %3129 = vmatprep.subr.bf16.mxu1 (!%p187_p2), %v3316_v10 }
   0x8   : > { %333 = vmatprep.subr.bf16.mxu0 (!%p187_p2), %v3295_v3  ;;  %v3303_v8 = vld [vmem:[%s4379_s1 + $0x30] ss:$8 sps:$4 sm:$0xff] (!%p187_p2)   ;;  %v3304_v9 = vld [vmem:[%s4379_s1 + $0x44] ss:$8 sps:$4 sm:$0xff] (!%p187_p2)   ;;  %v3306_v12 = vld [vmem:[%s4379_s1 + $0x40] ss:$8 sps:$4 sm:$0xff] (!%p187_p2)  }
   0x9   : > { %v3317_v11 = vld [vmem:[%s4381_s3] sm:$0xff] (!%p187_p2)   ;;  %v3318_v13 = vld [vmem:[%s4381_s3 + $0x48] sm:$0xff] (!%p187_p2)   ;;  %v3320_v15 = vld [vmem:[%s4381_s3 + $0x50] sm:$0xff] (!%p187_p2)   ;;  %v242_v48 = vshrl.u32 (!%p187_p2), %v241_v47, 7 }
   0xa   : > { %3130 = vmatpush3.bf16.msra.mxu1 (!%p187_p2), %v3317_v11  ;;  %v3319_v14 = vld [vmem:[%s4381_s3 + $0x8] sm:$0xff] (!%p187_p2)   ;;  %v3307_v16 = vld [vmem:[%s4379_s1 + $0x54] ss:$8 sps:$4 sm:$0xff] (!%p187_p2)   ;;  %v3309_v17 = vld [vmem:[%s4379_s1 + $0x50] ss:$8 sps:$4 sm:$0xff] (!%p187_p2)  }
   0xb   : > { %334 = vmatpush1.bf16.msra.mxu0 (!%p187_p2), %v3297_v4  ;;  %3131 = vmatprep.subr.bf16.mxu1 (!%p187_p2), %v3318_v13  ;;  %v3321_v18 = vld [vmem:[%s4381_s3 + $0x10] sm:$0xff] (!%p187_p2)   ;;  %v3322_v19 = vld [vmem:[%s4381_s3 + $0x58] sm:$0xff] (!%p187_p2)   ;;  %v3310_v20 = vld [vmem:[%s4379_s1 + $0x64] ss:$8 sps:$4 sm:$0xff] (!%p187_p2)   ;;  %v3765_v49 = vsub.s32 (!%p187_p2), 0, %v242_v48  ;;  %v3770_v51 = vsub.s32 (!%p187_p2), 1, %v242_v48 }
   0xc   : > { %335 = vmatprep.subr.bf16.mxu0 (!%p187_p2), %v3298_v5  ;;  %v3312_v21 = vld [vmem:[%s4379_s1 + $0x60] ss:$8 sps:$4 sm:$0xff] (!%p187_p2)   ;;  %v3313_v22 = vld [vmem:[%s4379_s1 + $0x74] ss:$8 sps:$4 sm:$0xff] (!%p187_p2)   ;;  %v3315_v26 = vld [vmem:[%s4379_s1 + $0x70] ss:$8 sps:$4 sm:$0xff] (!%p187_p2)  }
   0xd   : > { %s4385_s19 = smov (!%p212_p3, %s2589_s19), 1  ;;  %v3323_v23 = vld [vmem:[%s4381_s3 + $0x18] sm:$0xff]   ;;  %v3324_v24 = vld [vmem:[%s4381_s3 + $0x60] sm:$0xff]   ;;  %v3326_v28 = vld [vmem:[%s4381_s3 + $0x68] sm:$0xff]  }
   0xe   : > { %3132 = vmatpush3.bf16.msra.mxu1 %v3319_v14  ;;  %s2594_s8 = sshll.u32 %s4385_s19, 3  ;;  %v3325_v25 = vld [vmem:[%s4381_s3 + $0x20] sm:$0xff]   ;;  %v3327_v29 = vld [vmem:[%s4381_s3 + $0x28] sm:$0xff]   ;;  %v3328_v30 = vld [vmem:[%s4381_s3 + $0x70] sm:$0xff]  }
   0xf   : > { %336 = vmatpush1.bf16.msra.mxu0 %v3300_v6  ;;  %3133 = vmatprep.subr.bf16.mxu1 %v3320_v15  ;;  %s215_s21 = scalar_lea.vmem %s4378_s0, %s2594_s8  ;;  %v3329_v32 = vld [vmem:[%s4381_s3 + $0x30] sm:$0xff]   ;;  %v3330_v33 = vld [vmem:[%s4381_s3 + $0x78] sm:$0xff]   ;;  %v3332_v35 = vld [vmem:[%s4379_s1 + $0x80] ss:$8 sps:$4 sm:$0xff]   ;;  %s219_s14 = scalar_lea.vmem %s4383_s5, %s2594_s8 }
  0x10   : > { %337 = vmatprep.subr.bf16.mxu0 %v3301_v7  ;;  %v221_v27 = vld [vmem:[%s215_s21] sm:$0xff]  ;;  %v3331_v34 = vld [vmem:[%s4381_s3 + $0x38] sm:$0xff]   ;;  %v3358_v5 = vld [vmem:[%s4381_s3 + $0xc8] sm:$0xff]  }
  0x11   : > { %v222_v31 = vpack.c.bf16 %v221_v27, %v221_v27  ;;  %v3334_v36 = vld [vmem:[%s4379_s1 + $0x84] ss:$8 sps:$4 sm:$0xff]   ;;  %v3337_v37 = vld [vmem:[%s4379_s1 + $0x94] ss:$8 sps:$4 sm:$0xff]   ;;  %v3335_v38 = vld [vmem:[%s4379_s1 + $0x90] ss:$8 sps:$4 sm:$0xff]  }
  0x12   : > { %3134 = vmatpush3.bf16.msra.mxu1 %v3321_v18  ;;  %v3340_v39 = vld [vmem:[%s4379_s1 + $0xa4] ss:$8 sps:$4 sm:$0xff]   ;;  %v3338_v40 = vld [vmem:[%s4379_s1 + $0xa0] ss:$8 sps:$4 sm:$0xff]   ;;  %v3343_v41 = vld [vmem:[%s4379_s1 + $0xb4] ss:$8 sps:$4 sm:$0xff]  }
  0x13   : > { %338 = vmatpush1.bf16.msra.mxu0 %v3303_v8  ;;  %3135 = vmatprep.subr.bf16.mxu1 %v3322_v19  ;;  %v3341_v42 = vld [vmem:[%s4379_s1 + $0xb0] ss:$8 sps:$4 sm:$0xff]   ;;  %v3346_v43 = vld [vmem:[%s4379_s1 + $0xc4] ss:$8 sps:$4 sm:$0xff]   ;;  %v3344_v44 = vld [vmem:[%s4379_s1 + $0xc0] ss:$8 sps:$4 sm:$0xff]  }
  0x14   : > { %339 = vmatprep.subr.bf16.mxu0 %v3304_v9  ;;  %v3349_v45 = vld [vmem:[%s4379_s1 + $0xd4] ss:$8 sps:$4 sm:$0xff]   ;;  %v3347_v46 = vld [vmem:[%s4379_s1 + $0xd0] ss:$8 sps:$4 sm:$0xff]   ;;  %v239_v50 = vld [vmem:[%s4380_s2] sm:$0x3] }
  0x15   : > { %v244_v52 = vrot.slane %v239_v50, %v3765_v49  ;;  %v248_v53 = vrot.slane %v239_v50, %v3770_v51  ;;  %v3352_v62 = vld [vmem:[%s4379_s1 + $0xe4] ss:$8 sps:$4 sm:$0xff]   ;;  %v3350_v63 = vld [vmem:[%s4379_s1 + $0xe0] ss:$8 sps:$4 sm:$0xff]   ;;  %v3355_v0 = vld [vmem:[%s4379_s1 + $0xf4] ss:$8 sps:$4 sm:$0xff]  }
  0x16   : > { %3136 = vmatpush3.bf16.msra.mxu1 %v3323_v23  ;;  %v3353_v1 = vld [vmem:[%s4379_s1 + $0xf0] ss:$8 sps:$4 sm:$0xff]   ;;  %v3356_v3 = vld [vmem:[%s4381_s3 + $0xc0] sm:$0xff]   ;;  %v3359_v6 = vld [vmem:[%s4381_s3 + $0x88] sm:$0xff]  }
  0x17   : > { %340 = vmatpush1.bf16.msra.mxu0 %v3306_v12  ;;  %3137 = vmatprep.subr.bf16.mxu1 %v3324_v24  ;;  %v3357_v4 = vld [vmem:[%s4381_s3 + $0x80] sm:$0xff]   ;;  %v3360_v7 = vld [vmem:[%s4381_s3 + $0xd0] sm:$0xff]   ;;  %v3362_v9 = vld [vmem:[%s4381_s3 + $0xd8] sm:$0xff]  }
  0x18   : > { %341 = vmatprep.subr.bf16.mxu0 %v3307_v16  ;;  %v3361_v8 = vld [vmem:[%s4381_s3 + $0x90] sm:$0xff]   ;;  %v3363_v10 = vld [vmem:[%s4381_s3 + $0x98] sm:$0xff]   ;;  %v3364_v11 = vld [vmem:[%s4381_s3 + $0xe0] sm:$0xff]  }
  0x19   : > { %v3365_v12 = vld [vmem:[%s4381_s3 + $0xa0] sm:$0xff]   ;;  %v3366_v13 = vld [vmem:[%s4381_s3 + $0xe8] sm:$0xff]   ;;  %v3368_v15 = vld [vmem:[%s4381_s3 + $0xf0] sm:$0xff]  }
  0x1a   : > { %3138 = vmatpush3.bf16.msra.mxu1 %v3325_v25  ;;  %v3367_v14 = vld [vmem:[%s4381_s3 + $0xa8] sm:$0xff]   ;;  %v3369_v24 = vld [vmem:[%s4381_s3 + $0xb0] sm:$0xff]   ;;  %v3370_v25 = vld [vmem:[%s4381_s3 + $0xf8] sm:$0xff]  }
  0x1b   : > { %342 = vmatpush1.bf16.msra.mxu0 %v3309_v17  ;;  %3139 = vmatprep.subr.bf16.mxu1 %v3326_v28  ;;  %v2612_v17 = vld [vmem:[%s4382_s4] ss:$0 sm:$0xff]  ;;  %v3374_v28 = vld [vmem:[%s4379_s1 + $0x104] ss:$8 sps:$4 sm:$0xff]  }
  0x1c   : > { %343 = vmatprep.subr.bf16.mxu0 %v3310_v20  ;;  %v3372_v27 = vld [vmem:[%s4379_s1 + $0x100] ss:$8 sps:$4 sm:$0xff]  }
  0x1e   : > { %3140 = vmatpush3.bf16.msra.mxu1 %v3327_v29  ;;  %v3377_v29 = vld [vmem:[%s4379_s1 + $0x114] ss:$8 sps:$4 sm:$0xff]  }
  0x1f   : > { %344 = vmatpush1.bf16.msra.mxu0 %v3312_v21  ;;  %3141 = vmatprep.subr.bf16.mxu1 %v3328_v30  ;;  %v3375_v30 = vld [vmem:[%s4379_s1 + $0x110] ss:$8 sps:$4 sm:$0xff]  }
  0x20   : > { %345 = vmatprep.subr.bf16.mxu0 %v3313_v22 }
  0x22   : > { %3142 = vmatpush3.bf16.msra.mxu1 %v3329_v32  ;;  %v3378_v32 = vld [vmem:[%s4379_s1 + $0x120] ss:$8 sps:$4 sm:$0xff]  }
  0x23   : > { %346 = vmatpush1.bf16.msra.mxu0 %v3315_v26  ;;  %3143 = vmatprep.subr.bf16.mxu1 %v3330_v33  ;;  %v3371_v26 = vld [vmem:[%s4381_s3 + $0xb8] sm:$0xff]  }
  0x24   : > { %660 = vmatprep.subr.bf16.mxu0 %v3334_v36  ;;  %v3383_v33 = vld [vmem:[%s4379_s1 + $0x134] ss:$8 sps:$4 sm:$0xff]   ;;  %v3384_v36 = vld [vmem:[%s4379_s1 + $0x140] ss:$8 sps:$4 sm:$0xff]  }
  0x26   : > { %364 = vmatmul.mubr.bf16.vlgmr.msra.gmra.mrb[0].mxu0 %v222_v31  ;;  %3144 = vmatpush3.bf16.msra.mxu1 %v3331_v34  ;;  %v3380_v31 = vld [vmem:[%s4379_s1 + $0x124] ss:$8 sps:$4 sm:$0xff]   ;;  %v3381_v34 = vld [vmem:[%s4379_s1 + $0x130] ss:$8 sps:$4 sm:$0xff]  }
  0x27   : > { %692 = vmatprep.mubr.bf16.mxu0 %v3580_v2  ;;  %661 = vmatpush1.bf16.msra.mxu0 %v3332_v35  ;;  %v3386_v35 = vld [vmem:[%s4379_s1 + $0x144] ss:$8 sps:$4 sm:$0xff]  }
  0x28   : > { %662 = vmatprep.subr.bf16.mxu0 %v3337_v37  ;;  %3151 = vmatprep.subr.bf16.mxu1 %v3356_v3  ;;  %v3389_v37 = vld [vmem:[%s4379_s1 + $0x154] ss:$8 sps:$4 sm:$0xff]   ;;  %v3406_v3 = vld [vmem:[%s4381_s3 + $0x168] sm:$0xff]  }
  0x2b   : > { %663 = vmatpush1.bf16.msra.mxu0 %v3335_v38  ;;  %v3387_v38 = vld [vmem:[%s4379_s1 + $0x150] ss:$8 sps:$4 sm:$0xff]  }
  0x2c   : > { %664 = vmatprep.subr.bf16.mxu0 %v3340_v39  ;;  %v2645_v39 = vld [vmem:[%s4380_s2 + $0x2] sm:$0x3] }
  0x2f   : > { %665 = vmatpush1.bf16.msra.mxu0 %v3338_v40  ;;  %v573_v40 = vrot.slane %v2645_v39, %v3765_v49 }
  0x30   : > { %666 = vmatprep.subr.bf16.mxu0 %v3343_v41  ;;  %v577_v41 = vrot.slane %v2645_v39, %v3770_v51 }
  0x33   : > { %667 = vmatpush1.bf16.msra.mxu0 %v3341_v42 }
  0x34   : > { %668 = vmatprep.subr.bf16.mxu0 %v3346_v43 }
  0x37   : > { %669 = vmatpush1.bf16.msra.mxu0 %v3344_v44 }
  0x38   : > { %670 = vmatprep.subr.bf16.mxu0 %v3349_v45 }
  0x3b   : > { %671 = vmatpush1.bf16.msra.mxu0 %v3347_v46 }
  0x3c   : > { %672 = vmatprep.subr.bf16.mxu0 %v3352_v62  ;;  %v3402_v62 = vld [vmem:[%s4381_s3 + $0x158] sm:$0xff]  }
  0x3f   : > { %673 = vmatpush1.bf16.msra.mxu0 %v3350_v63  ;;  %v3403_v63 = vld [vmem:[%s4381_s3 + $0x118] sm:$0xff]  }
  0x40   : > { %674 = vmatprep.subr.bf16.mxu0 %v3355_v0  ;;  %v3404_v0 = vld [vmem:[%s4381_s3 + $0x160] sm:$0xff]  }
  0x43   : > { %675 = vmatpush1.bf16.msra.mxu0 %v3353_v1  ;;  %v3405_v1 = vld [vmem:[%s4381_s3 + $0x120] sm:$0xff]  }
  0x44   : > { %991 = vmatprep.subr.bf16.mxu0 %v3374_v28  ;;  %v3427_v28 = vld [vmem:[%s4379_s1 + $0x1d0] ss:$8 sps:$4 sm:$0xff]  }
  0xf9   : > { %v365_v54 = vpop.f32.mrb[0].mxu0 }
  0xfa   : > { %v366_v55 = vadd.f32 %v365_v54, %v244_v52  ;;  %v367_v56 = vpop.f32.mrb[1].mxu0  ;;  %v3392_v52 = vld [vmem:[%s4379_s1 + $0x164] ss:$8 sps:$4 sm:$0xff]   ;;  %v3395_v54 = vld [vmem:[%s4379_s1 + $0x174] ss:$8 sps:$4 sm:$0xff]  }
  0xfb   : > { %v369_v57 = vpop.f32.mrb[2].mxu0  ;;  %v368_v58 = vadd.f32 %v367_v56, %v248_v53  ;;  %v3390_v53 = vld [vmem:[%s4379_s1 + $0x160] ss:$8 sps:$4 sm:$0xff]  }
  0xfc   : > { %v370_v59 = vpop.f32.mrb[3].mxu0  ;;  %v372_v61 = vpack.c.bf16 %v366_v55, %v366_v55  ;;  %v3393_v55 = vld [vmem:[%s4379_s1 + $0x170] ss:$8 sps:$4 sm:$0xff]   ;;  %v3396_v56 = vld [vmem:[%s4381_s3 + $0x140] sm:$0xff]  }
  0xfd   : > { %v373_v60 = vpack.c.bf16 %v368_v58, %v368_v58  ;;  %v3397_v57 = vld [vmem:[%s4381_s3 + $0x100] sm:$0xff]   ;;  %v3398_v58 = vld [vmem:[%s4381_s3 + $0x148] sm:$0xff]  }
  0xfe   : > { %v3399_v59 = vld [vmem:[%s4381_s3 + $0x108] sm:$0xff]  }
  0xff   : > { %541 = vmatprep.mubr.bf16.mxu1 %v373_v60  ;;  %v3400_v60 = vld [vmem:[%s4381_s3 + $0x150] sm:$0xff]  }
 0x100   : > { %542 = vmatmul.mubr.bf16.vlgmr.msra.gmra.mrb[0].mxu1 %v372_v61  ;;  %v3401_v61 = vld [vmem:[%s4381_s3 + $0x110] sm:$0xff]  }
 0x101   : > { %3152 = vmatpush3.bf16.msra.mxu1 %v3357_v4  ;;  %v3407_v4 = vld [vmem:[%s4381_s3 + $0x128] sm:$0xff]  }
 0x102   : > { %3153 = vmatprep.subr.bf16.mxu1 %v3358_v5  ;;  %v3408_v5 = vld [vmem:[%s4381_s3 + $0x170] sm:$0xff]  }
 0x105   : > { %3154 = vmatpush3.bf16.msra.mxu1 %v3359_v6 }
 0x106   : > { %3155 = vmatprep.subr.bf16.mxu1 %v3360_v7  ;;  %v2695_v7 = vld [vmem:[%s4382_s4 + $0x1] ss:$0 sm:$0xff] }
 0x109   : > { %3156 = vmatpush3.bf16.msra.mxu1 %v3361_v8 }
 0x10a   : > { %3157 = vmatprep.subr.bf16.mxu1 %v3362_v9 }
 0x10d   : > { %3158 = vmatpush3.bf16.msra.mxu1 %v3363_v10 }
 0x10e   : > { %3159 = vmatprep.subr.bf16.mxu1 %v3364_v11 }
 0x111   : > { %3160 = vmatpush3.bf16.msra.mxu1 %v3365_v12 }
 0x112   : > { %3161 = vmatprep.subr.bf16.mxu1 %v3366_v13 }
 0x115   : > { %3162 = vmatpush3.bf16.msra.mxu1 %v3367_v14  ;;  %v3409_v14 = vld [vmem:[%s4381_s3 + $0x130] sm:$0xff]  }
 0x116   : > { %3163 = vmatprep.subr.bf16.mxu1 %v3368_v15  ;;  %v3410_v15 = vld [vmem:[%s4381_s3 + $0x178] sm:$0xff]  }
 0x119   : > { %3164 = vmatpush3.bf16.msra.mxu1 %v3369_v24  ;;  %v3421_v24 = vld [vmem:[%s4379_s1 + $0x1b0] ss:$8 sps:$4 sm:$0xff]  }
 0x11a   : > { %3165 = vmatprep.subr.bf16.mxu1 %v3370_v25  ;;  %v3426_v25 = vld [vmem:[%s4379_s1 + $0x1c4] ss:$8 sps:$4 sm:$0xff]  }
 0x11d   : > { %3166 = vmatpush3.bf16.msra.mxu1 %v3371_v26  ;;  %v3424_v26 = vld [vmem:[%s4379_s1 + $0x1c0] ss:$8 sps:$4 sm:$0xff]  }
 0x11e   : > { %3173 = vmatprep.subr.bf16.mxu1 %v3396_v56  ;;  %v3446_v56 = vld [vmem:[%s4381_s3 + $0x1e8] sm:$0xff]  }
 0x1d3   : > { %v3145_v16 = vpop.f32.mrb[0].mxu1 }
 0x1d4   : > { %v3146_v18 = vpop.f32.mrb[1].mxu1 }
 0x1d5   : > { %v3147_v19 = vadd.f32 %v3146_v18, %v3145_v16  ;;  %v3148_v20 = vpop.f32.mrb[2].mxu1  ;;  %v3411_v16 = vld [vmem:[%s4381_s3 + $0x138] sm:$0xff]   ;;  %v3414_v18 = vld [vmem:[%s4379_s1 + $0x184] ss:$8 sps:$4 sm:$0xff]  }
 0x1d6   : > { %v3149_v21 = vpop.f32.mrb[3].mxu1  ;;  %v3415_v20 = vld [vmem:[%s4379_s1 + $0x190] ss:$8 sps:$4 sm:$0xff]  }
 0x1d7   : > { %v544_v22 = vadd.f32 %v3147_v19, %v2612_v17  ;;  %v3412_v17 = vld [vmem:[%s4379_s1 + $0x180] ss:$8 sps:$4 sm:$0xff]   ;;  %v3417_v19 = vld [vmem:[%s4379_s1 + $0x194] ss:$8 sps:$4 sm:$0xff]   ;;  %v3420_v21 = vld [vmem:[%s4379_s1 + $0x1a4] ss:$8 sps:$4 sm:$0xff]  }
 0x1d9   : > { %v549_v23 = vpack.c.bf16 %v544_v22, %v544_v22  ;;  %v3418_v22 = vld [vmem:[%s4379_s1 + $0x1a0] ss:$8 sps:$4 sm:$0xff]  }
 0x1db   : > { %693 = vmatmul.mubr.bf16.vlgmr.msra.gmra.mrb[4].mxu0 %v549_v23  ;;  %v3423_v23 = vld [vmem:[%s4379_s1 + $0x1b4] ss:$8 sps:$4 sm:$0xff]  }
 0x1dc   : > { %1023 = vmatprep.mubr.bf16.mxu0 %v3580_v2  ;;  %992 = vmatpush1.bf16.msra.mxu0 %v3372_v27  ;;  %v3429_v27 = vld [vmem:[%s4379_s1 + $0x1d4] ss:$8 sps:$4 sm:$0xff]  }
 0x1dd   : > { %993 = vmatprep.subr.bf16.mxu0 %v3377_v29  ;;  %v2728_v29 = vld [vmem:[%s4380_s2 + $0x4] sm:$0x3] }
 0x1e0   : > { %994 = vmatpush1.bf16.msra.mxu0 %v3375_v30  ;;  %v904_v30 = vrot.slane %v2728_v29, %v3765_v49 }
 0x1e1   : > { %995 = vmatprep.subr.bf16.mxu0 %v3380_v31  ;;  %v908_v31 = vrot.slane %v2728_v29, %v3770_v51 }
 0x1e4   : > { %996 = vmatpush1.bf16.msra.mxu0 %v3378_v32 }
 0x1e5   : > { %997 = vmatprep.subr.bf16.mxu0 %v3383_v33 }
 0x1e8   : > { %998 = vmatpush1.bf16.msra.mxu0 %v3381_v34 }
 0x1e9   : > { %999 = vmatprep.subr.bf16.mxu0 %v3386_v35 }
 0x1ec   : > { %1000 = vmatpush1.bf16.msra.mxu0 %v3384_v36 }
 0x1ed   : > { %1001 = vmatprep.subr.bf16.mxu0 %v3389_v37 }
 0x1f0   : > { %1002 = vmatpush1.bf16.msra.mxu0 %v3387_v38 }
 0x1f1   : > { %1003 = vmatprep.subr.bf16.mxu0 %v3392_v52  ;;  %v3442_v52 = vld [vmem:[%s4381_s3 + $0x1d8] sm:$0xff]  }
 0x1f4   : > { %1004 = vmatpush1.bf16.msra.mxu0 %v3390_v53  ;;  %v3443_v53 = vld [vmem:[%s4381_s3 + $0x198] sm:$0xff]  }
 0x1f5   : > { %1005 = vmatprep.subr.bf16.mxu0 %v3395_v54  ;;  %v3444_v54 = vld [vmem:[%s4381_s3 + $0x1e0] sm:$0xff]  }
 0x1f8   : > { %1006 = vmatpush1.bf16.msra.mxu0 %v3393_v55  ;;  %v3445_v55 = vld [vmem:[%s4381_s3 + $0x1a0] sm:$0xff]  }
 0x1f9   : > { %1322 = vmatprep.subr.bf16.mxu0 %v3414_v18  ;;  %v3467_v18 = vld [vmem:[%s4379_s1 + $0x250] ss:$8 sps:$4 sm:$0xff]  }
 0x2ae   : > { %v694_v42 = vpop.f32.mrb[4].mxu0 }
 0x2af   : > { %v695_v43 = vadd.f32 %v694_v42, %v573_v40  ;;  %v696_v44 = vpop.f32.mrb[5].mxu0  ;;  %v3432_v40 = vld [vmem:[%s4379_s1 + $0x1e4] ss:$8 sps:$4 sm:$0xff]   ;;  %v3435_v42 = vld [vmem:[%s4379_s1 + $0x1f4] ss:$8 sps:$4 sm:$0xff]  }
 0x2b0   : > { %v697_v45 = vadd.f32 %v696_v44, %v577_v41  ;;  %v698_v46 = vpop.f32.mrb[6].mxu0  ;;  %v3430_v41 = vld [vmem:[%s4379_s1 + $0x1e0] ss:$8 sps:$4 sm:$0xff]  }
 0x2b1   : > { %v699_v47 = vpop.f32.mrb[7].mxu0  ;;  %v701_v50 = vpack.c.bf16 %v695_v43, %v695_v43  ;;  %v3433_v43 = vld [vmem:[%s4379_s1 + $0x1f0] ss:$8 sps:$4 sm:$0xff]   ;;  %v3436_v44 = vld [vmem:[%s4381_s3 + $0x1c0] sm:$0xff]   ;;  %v3438_v46 = vld [vmem:[%s4381_s3 + $0x1c8] sm:$0xff]  }
 0x2b2   : > { %v702_v48 = vpack.c.bf16 %v697_v45, %v697_v45  ;;  %v3437_v45 = vld [vmem:[%s4381_s3 + $0x180] sm:$0xff]   ;;  %v3439_v47 = vld [vmem:[%s4381_s3 + $0x188] sm:$0xff]  }
 0x2b4   : > { %872 = vmatprep.mubr.bf16.mxu1 %v702_v48  ;;  %v3440_v48 = vld [vmem:[%s4381_s3 + $0x1d0] sm:$0xff]  }
 0x2b5   : > { %873 = vmatmul.mubr.bf16.vlgmr.msra.gmra.mrb[4].mxu1 %v701_v50  ;;  %v3441_v50 = vld [vmem:[%s4381_s3 + $0x190] sm:$0xff]  }
 0x2b6   : > { %3174 = vmatpush3.bf16.msra.mxu1 %v3397_v57  ;;  %v3447_v57 = vld [vmem:[%s4381_s3 + $0x1a8] sm:$0xff]  }
 0x2b7   : > { %3175 = vmatprep.subr.bf16.mxu1 %v3398_v58  ;;  %v3448_v58 = vld [vmem:[%s4381_s3 + $0x1f0] sm:$0xff]  }
 0x2ba   : > { %3176 = vmatpush3.bf16.msra.mxu1 %v3399_v59 }
 0x2bb   : > { %3177 = vmatprep.subr.bf16.mxu1 %v3400_v60  ;;  %v2778_v60 = vld [vmem:[%s4382_s4 + $0x2] ss:$0 sm:$0xff] }
 0x2be   : > { %3178 = vmatpush3.bf16.msra.mxu1 %v3401_v61 }
 0x2bf   : > { %3179 = vmatprep.subr.bf16.mxu1 %v3402_v62 }
 0x2c2   : > { %3180 = vmatpush3.bf16.msra.mxu1 %v3403_v63 }
 0x2c3   : > { %3181 = vmatprep.subr.bf16.mxu1 %v3404_v0 }
 0x2c6   : > { %3182 = vmatpush3.bf16.msra.mxu1 %v3405_v1 }
 0x2c7   : > { %3183 = vmatprep.subr.bf16.mxu1 %v3406_v3 }
 0x2ca   : > { %3184 = vmatpush3.bf16.msra.mxu1 %v3407_v4  ;;  %v3449_v4 = vld [vmem:[%s4381_s3 + $0x1b0] sm:$0xff]  }
 0x2cb   : > { %3185 = vmatprep.subr.bf16.mxu1 %v3408_v5  ;;  %v3450_v5 = vld [vmem:[%s4381_s3 + $0x1f8] sm:$0xff]  }
 0x2ce   : > { %3186 = vmatpush3.bf16.msra.mxu1 %v3409_v14  ;;  %v3461_v14 = vld [vmem:[%s4379_s1 + $0x230] ss:$8 sps:$4 sm:$0xff]  }
 0x2cf   : > { %3187 = vmatprep.subr.bf16.mxu1 %v3410_v15  ;;  %v3466_v15 = vld [vmem:[%s4379_s1 + $0x244] ss:$8 sps:$4 sm:$0xff]  }
 0x2d2   : > { %3188 = vmatpush3.bf16.msra.mxu1 %v3411_v16  ;;  %v3464_v16 = vld [vmem:[%s4379_s1 + $0x240] ss:$8 sps:$4 sm:$0xff]  }
 0x2d3   : > { %3195 = vmatprep.subr.bf16.mxu1 %v3436_v44  ;;  %v3486_v44 = vld [vmem:[%s4381_s3 + $0x268] sm:$0xff]  }
 0x388   : > { %v3167_v6 = vpop.f32.mrb[4].mxu1 }
 0x389   : > { %v3168_v8 = vpop.f32.mrb[5].mxu1 }
 0x38a   : > { %v3169_v9 = vadd.f32 %v3168_v8, %v3167_v6  ;;  %v3170_v10 = vpop.f32.mrb[6].mxu1  ;;  %v3451_v6 = vld [vmem:[%s4381_s3 + $0x1b8] sm:$0xff]   ;;  %v3454_v8 = vld [vmem:[%s4379_s1 + $0x204] ss:$8 sps:$4 sm:$0xff]  }
 0x38b   : > { %v3171_v11 = vpop.f32.mrb[7].mxu1  ;;  %v3455_v10 = vld [vmem:[%s4379_s1 + $0x210] ss:$8 sps:$4 sm:$0xff]  }
 0x38c   : > { %v875_v12 = vadd.f32 %v3169_v9, %v2695_v7  ;;  %v3452_v7 = vld [vmem:[%s4379_s1 + $0x200] ss:$8 sps:$4 sm:$0xff]   ;;  %v3457_v9 = vld [vmem:[%s4379_s1 + $0x214] ss:$8 sps:$4 sm:$0xff]   ;;  %v3460_v11 = vld [vmem:[%s4379_s1 + $0x224] ss:$8 sps:$4 sm:$0xff]  }
 0x38e   : > { %v880_v13 = vpack.c.bf16 %v875_v12, %v875_v12  ;;  %v3458_v12 = vld [vmem:[%s4379_s1 + $0x220] ss:$8 sps:$4 sm:$0xff]  }
 0x390   : > { %1024 = vmatmul.mubr.bf16.vlgmr.msra.gmra.mrb[8].mxu0 %v880_v13  ;;  %v3463_v13 = vld [vmem:[%s4379_s1 + $0x234] ss:$8 sps:$4 sm:$0xff]  }
 0x391   : > { %1354 = vmatprep.mubr.bf16.mxu0 %v3580_v2  ;;  %1323 = vmatpush1.bf16.msra.mxu0 %v3412_v17  ;;  %v3469_v17 = vld [vmem:[%s4379_s1 + $0x254] ss:$8 sps:$4 sm:$0xff]  }
 0x392   : > { %1324 = vmatprep.subr.bf16.mxu0 %v3417_v19  ;;  %v2811_v19 = vld [vmem:[%s4380_s2 + $0x6] sm:$0x3] }
 0x395   : > { %1325 = vmatpush1.bf16.msra.mxu0 %v3415_v20  ;;  %v1235_v20 = vrot.slane %v2811_v19, %v3765_v49 }
 0x396   : > { %1326 = vmatprep.subr.bf16.mxu0 %v3420_v21  ;;  %v1239_v21 = vrot.slane %v2811_v19, %v3770_v51 }
 0x399   : > { %1327 = vmatpush1.bf16.msra.mxu0 %v3418_v22 }
 0x39a   : > { %1328 = vmatprep.subr.bf16.mxu0 %v3423_v23 }
 0x39d   : > { %1329 = vmatpush1.bf16.msra.mxu0 %v3421_v24 }
 0x39e   : > { %1330 = vmatprep.subr.bf16.mxu0 %v3426_v25 }
 0x3a1   : > { %1331 = vmatpush1.bf16.msra.mxu0 %v3424_v26 }
 0x3a2   : > { %1332 = vmatprep.subr.bf16.mxu0 %v3429_v27 }
 0x3a5   : > { %1333 = vmatpush1.bf16.msra.mxu0 %v3427_v28 }
 0x3a6   : > { %1334 = vmatprep.subr.bf16.mxu0 %v3432_v40  ;;  %v3482_v40 = vld [vmem:[%s4381_s3 + $0x258] sm:$0xff]  }
 0x3a9   : > { %1335 = vmatpush1.bf16.msra.mxu0 %v3430_v41  ;;  %v3483_v41 = vld [vmem:[%s4381_s3 + $0x218] sm:$0xff]  }
 0x3aa   : > { %1336 = vmatprep.subr.bf16.mxu0 %v3435_v42  ;;  %v3484_v42 = vld [vmem:[%s4381_s3 + $0x260] sm:$0xff]  }
 0x3ad   : > { %1337 = vmatpush1.bf16.msra.mxu0 %v3433_v43  ;;  %v3485_v43 = vld [vmem:[%s4381_s3 + $0x220] sm:$0xff]  }
 0x3ae   : > { %1653 = vmatprep.subr.bf16.mxu0 %v3454_v8  ;;  %v3507_v8 = vld [vmem:[%s4379_s1 + $0x2d0] ss:$8 sps:$4 sm:$0xff]  }
 0x463   : > { %v1025_v32 = vpop.f32.mrb[8].mxu0 }
 0x464   : > { %v1026_v33 = vadd.f32 %v1025_v32, %v904_v30  ;;  %v1027_v34 = vpop.f32.mrb[9].mxu0  ;;  %v3472_v30 = vld [vmem:[%s4379_s1 + $0x264] ss:$8 sps:$4 sm:$0xff]   ;;  %v3475_v32 = vld [vmem:[%s4379_s1 + $0x274] ss:$8 sps:$4 sm:$0xff]  }
 0x465   : > { %v1028_v35 = vadd.f32 %v1027_v34, %v908_v31  ;;  %v1029_v36 = vpop.f32.mrb[10].mxu0  ;;  %v3470_v31 = vld [vmem:[%s4379_s1 + $0x260] ss:$8 sps:$4 sm:$0xff]  }
 0x466   : > { %v1030_v37 = vpop.f32.mrb[11].mxu0  ;;  %v1032_v39 = vpack.c.bf16 %v1026_v33, %v1026_v33  ;;  %v3473_v33 = vld [vmem:[%s4379_s1 + $0x270] ss:$8 sps:$4 sm:$0xff]   ;;  %v3476_v34 = vld [vmem:[%s4381_s3 + $0x240] sm:$0xff]   ;;  %v3478_v36 = vld [vmem:[%s4381_s3 + $0x248] sm:$0xff]  }
 0x467   : > { %v1033_v38 = vpack.c.bf16 %v1028_v35, %v1028_v35  ;;  %v3477_v35 = vld [vmem:[%s4381_s3 + $0x200] sm:$0xff]   ;;  %v3479_v37 = vld [vmem:[%s4381_s3 + $0x208] sm:$0xff]  }
 0x469   : > { %1203 = vmatprep.mubr.bf16.mxu1 %v1033_v38  ;;  %v3480_v38 = vld [vmem:[%s4381_s3 + $0x250] sm:$0xff]  }
 0x46a   : > { %1204 = vmatmul.mubr.bf16.vlgmr.msra.gmra.mrb[8].mxu1 %v1032_v39  ;;  %v3481_v39 = vld [vmem:[%s4381_s3 + $0x210] sm:$0xff]  }
 0x46b   : > { %3196 = vmatpush3.bf16.msra.mxu1 %v3437_v45  ;;  %v3487_v45 = vld [vmem:[%s4381_s3 + $0x228] sm:$0xff]  }
 0x46c   : > { %3197 = vmatprep.subr.bf16.mxu1 %v3438_v46  ;;  %v3488_v46 = vld [vmem:[%s4381_s3 + $0x270] sm:$0xff]  }
 0x46f   : > { %3198 = vmatpush3.bf16.msra.mxu1 %v3439_v47 }
 0x470   : > { %3199 = vmatprep.subr.bf16.mxu1 %v3440_v48  ;;  %v2861_v48 = vld [vmem:[%s4382_s4 + $0x3] ss:$0 sm:$0xff] }
 0x473   : > { %3200 = vmatpush3.bf16.msra.mxu1 %v3441_v50 }
 0x474   : > { %3201 = vmatprep.subr.bf16.mxu1 %v3442_v52 }
 0x477   : > { %3202 = vmatpush3.bf16.msra.mxu1 %v3443_v53 }
 0x478   : > { %3203 = vmatprep.subr.bf16.mxu1 %v3444_v54 }
 0x47b   : > { %3204 = vmatpush3.bf16.msra.mxu1 %v3445_v55 }
 0x47c   : > { %3205 = vmatprep.subr.bf16.mxu1 %v3446_v56 }
 0x47f   : > { %3206 = vmatpush3.bf16.msra.mxu1 %v3447_v57  ;;  %v3489_v57 = vld [vmem:[%s4381_s3 + $0x230] sm:$0xff]  }
 0x480   : > { %3207 = vmatprep.subr.bf16.mxu1 %v3448_v58  ;;  %v3490_v58 = vld [vmem:[%s4381_s3 + $0x278] sm:$0xff]  }
 0x483   : > { %3208 = vmatpush3.bf16.msra.mxu1 %v3449_v4  ;;  %v3501_v4 = vld [vmem:[%s4379_s1 + $0x2b0] ss:$8 sps:$4 sm:$0xff]  }
 0x484   : > { %3209 = vmatprep.subr.bf16.mxu1 %v3450_v5  ;;  %v3506_v5 = vld [vmem:[%s4379_s1 + $0x2c4] ss:$8 sps:$4 sm:$0xff]  }
 0x487   : > { %3210 = vmatpush3.bf16.msra.mxu1 %v3451_v6  ;;  %v3504_v6 = vld [vmem:[%s4379_s1 + $0x2c0] ss:$8 sps:$4 sm:$0xff]  }
 0x488   : > { %3217 = vmatprep.subr.bf16.mxu1 %v3476_v34  ;;  %v3526_v34 = vld [vmem:[%s4381_s3 + $0x2e8] sm:$0xff]  }
 0x53d   : > { %v3189_v59 = vpop.f32.mrb[8].mxu1 }
 0x53e   : > { %v3190_v61 = vpop.f32.mrb[9].mxu1 }
 0x53f   : > { %v3191_v62 = vadd.f32 %v3190_v61, %v3189_v59  ;;  %v3192_v63 = vpop.f32.mrb[10].mxu1  ;;  %v3491_v59 = vld [vmem:[%s4381_s3 + $0x238] sm:$0xff]   ;;  %v3494_v61 = vld [vmem:[%s4379_s1 + $0x284] ss:$8 sps:$4 sm:$0xff]  }
 0x540   : > { %v3193_v0 = vpop.f32.mrb[11].mxu1  ;;  %v3495_v63 = vld [vmem:[%s4379_s1 + $0x290] ss:$8 sps:$4 sm:$0xff]  }
 0x541   : > { %v1206_v1 = vadd.f32 %v3191_v62, %v2778_v60  ;;  %v3492_v60 = vld [vmem:[%s4379_s1 + $0x280] ss:$8 sps:$4 sm:$0xff]   ;;  %v3497_v62 = vld [vmem:[%s4379_s1 + $0x294] ss:$8 sps:$4 sm:$0xff]   ;;  %v3500_v0 = vld [vmem:[%s4379_s1 + $0x2a4] ss:$8 sps:$4 sm:$0xff]  }
 0x543   : > { %v1211_v3 = vpack.c.bf16 %v1206_v1, %v1206_v1  ;;  %v3498_v1 = vld [vmem:[%s4379_s1 + $0x2a0] ss:$8 sps:$4 sm:$0xff]  }
 0x545   : > { %1355 = vmatmul.mubr.bf16.vlgmr.msra.gmra.mrb[12].mxu0 %v1211_v3  ;;  %v3503_v3 = vld [vmem:[%s4379_s1 + $0x2b4] ss:$8 sps:$4 sm:$0xff]  }
 0x546   : > { %1685 = vmatprep.mubr.bf16.mxu0 %v3580_v2  ;;  %1654 = vmatpush1.bf16.msra.mxu0 %v3452_v7  ;;  %v3509_v7 = vld [vmem:[%s4379_s1 + $0x2d4] ss:$8 sps:$4 sm:$0xff]  }
 0x547   : > { %1655 = vmatprep.subr.bf16.mxu0 %v3457_v9  ;;  %v2894_v9 = vld [vmem:[%s4380_s2 + $0x8] sm:$0x3] }
 0x54a   : > { %1656 = vmatpush1.bf16.msra.mxu0 %v3455_v10  ;;  %v1566_v10 = vrot.slane %v2894_v9, %v3765_v49 }
 0x54b   : > { %1657 = vmatprep.subr.bf16.mxu0 %v3460_v11  ;;  %v1570_v11 = vrot.slane %v2894_v9, %v3770_v51  ;;  %v3552_v9 = vld [vmem:[%s4379_s1 + $0x364] ss:$8 sps:$4 sm:$0xff]  }
 0x54e   : > { %1658 = vmatpush1.bf16.msra.mxu0 %v3458_v12 }
 0x54f   : > { %1659 = vmatprep.subr.bf16.mxu0 %v3463_v13 }
 0x552   : > { %1660 = vmatpush1.bf16.msra.mxu0 %v3461_v14 }
 0x553   : > { %1661 = vmatprep.subr.bf16.mxu0 %v3466_v15 }
 0x556   : > { %1662 = vmatpush1.bf16.msra.mxu0 %v3464_v16 }
 0x557   : > { %1663 = vmatprep.subr.bf16.mxu0 %v3469_v17 }
 0x55a   : > { %1664 = vmatpush1.bf16.msra.mxu0 %v3467_v18 }
 0x55b   : > { %1665 = vmatprep.subr.bf16.mxu0 %v3472_v30  ;;  %v3522_v30 = vld [vmem:[%s4381_s3 + $0x2d8] sm:$0xff]  }
 0x55e   : > { %1666 = vmatpush1.bf16.msra.mxu0 %v3470_v31  ;;  %v3523_v31 = vld [vmem:[%s4381_s3 + $0x298] sm:$0xff]  }
 0x55f   : > { %1667 = vmatprep.subr.bf16.mxu0 %v3475_v32  ;;  %v3524_v32 = vld [vmem:[%s4381_s3 + $0x2e0] sm:$0xff]  }
 0x562   : > { %1668 = vmatpush1.bf16.msra.mxu0 %v3473_v33  ;;  %v3525_v33 = vld [vmem:[%s4381_s3 + $0x2a0] sm:$0xff]  }
 0x563   : > { %1984 = vmatprep.subr.bf16.mxu0 %v3494_v61  ;;  %v2977_v61 = vld [vmem:[%s4380_s2 + $0xa] sm:$0x3] }
 0x618   : > { %v1356_v22 = vpop.f32.mrb[12].mxu0 }
 0x619   : > { %v1357_v23 = vadd.f32 %v1356_v22, %v1235_v20  ;;  %v1358_v24 = vpop.f32.mrb[13].mxu0  ;;  %v3512_v20 = vld [vmem:[%s4379_s1 + $0x2e4] ss:$8 sps:$4 sm:$0xff]   ;;  %v3515_v22 = vld [vmem:[%s4379_s1 + $0x2f4] ss:$8 sps:$4 sm:$0xff]  }
 0x61a   : > { %v1359_v25 = vadd.f32 %v1358_v24, %v1239_v21  ;;  %v1360_v26 = vpop.f32.mrb[14].mxu0  ;;  %v3510_v21 = vld [vmem:[%s4379_s1 + $0x2e0] ss:$8 sps:$4 sm:$0xff]  }
 0x61b   : > { %v1361_v27 = vpop.f32.mrb[15].mxu0  ;;  %v1363_v29 = vpack.c.bf16 %v1357_v23, %v1357_v23  ;;  %v3513_v23 = vld [vmem:[%s4379_s1 + $0x2f0] ss:$8 sps:$4 sm:$0xff]   ;;  %v3516_v24 = vld [vmem:[%s4381_s3 + $0x2c0] sm:$0xff]   ;;  %v3518_v26 = vld [vmem:[%s4381_s3 + $0x2c8] sm:$0xff]  }
 0x61c   : > { %v1364_v28 = vpack.c.bf16 %v1359_v25, %v1359_v25  ;;  %v3517_v25 = vld [vmem:[%s4381_s3 + $0x280] sm:$0xff]   ;;  %v3519_v27 = vld [vmem:[%s4381_s3 + $0x288] sm:$0xff]  }
 0x61e   : > { %1534 = vmatprep.mubr.bf16.mxu1 %v1364_v28  ;;  %v3520_v28 = vld [vmem:[%s4381_s3 + $0x2d0] sm:$0xff]  }
 0x61f   : > { %1535 = vmatmul.mubr.bf16.vlgmr.msra.gmra.mrb[12].mxu1 %v1363_v29  ;;  %v3521_v29 = vld [vmem:[%s4381_s3 + $0x290] sm:$0xff]  }
 0x620   : > { %3218 = vmatpush3.bf16.msra.mxu1 %v3477_v35  ;;  %v3527_v35 = vld [vmem:[%s4381_s3 + $0x2a8] sm:$0xff]  }
 0x621   : > { %3219 = vmatprep.subr.bf16.mxu1 %v3478_v36  ;;  %v3528_v36 = vld [vmem:[%s4381_s3 + $0x2f0] sm:$0xff]  }
 0x624   : > { %3220 = vmatpush3.bf16.msra.mxu1 %v3479_v37 }
 0x625   : > { %3221 = vmatprep.subr.bf16.mxu1 %v3480_v38  ;;  %v2944_v38 = vld [vmem:[%s4382_s4 + $0x4] ss:$0 sm:$0xff] }
 0x628   : > { %3222 = vmatpush3.bf16.msra.mxu1 %v3481_v39 }
 0x629   : > { %3223 = vmatprep.subr.bf16.mxu1 %v3482_v40 }
 0x62c   : > { %3224 = vmatpush3.bf16.msra.mxu1 %v3483_v41 }
 0x62d   : > { %3225 = vmatprep.subr.bf16.mxu1 %v3484_v42 }
 0x630   : > { %3226 = vmatpush3.bf16.msra.mxu1 %v3485_v43 }
 0x631   : > { %3227 = vmatprep.subr.bf16.mxu1 %v3486_v44 }
 0x634   : > { %3228 = vmatpush3.bf16.msra.mxu1 %v3487_v45  ;;  %v3529_v45 = vld [vmem:[%s4381_s3 + $0x2b0] sm:$0xff]  }
 0x635   : > { %3229 = vmatprep.subr.bf16.mxu1 %v3488_v46  ;;  %v3530_v46 = vld [vmem:[%s4381_s3 + $0x2f8] sm:$0xff]  }
 0x638   : > { %3230 = vmatpush3.bf16.msra.mxu1 %v3489_v57  ;;  %v3546_v57 = vld [vmem:[%s4379_s1 + $0x344] ss:$8 sps:$4 sm:$0xff]  }
 0x639   : > { %3231 = vmatprep.subr.bf16.mxu1 %v3490_v58  ;;  %v3544_v58 = vld [vmem:[%s4379_s1 + $0x340] ss:$8 sps:$4 sm:$0xff]  }
 0x63c   : > { %3232 = vmatpush3.bf16.msra.mxu1 %v3491_v59  ;;  %v3549_v59 = vld [vmem:[%s4379_s1 + $0x354] ss:$8 sps:$4 sm:$0xff]  }
 0x63d   : > { %3239 = vmatprep.subr.bf16.mxu1 %v3516_v24  ;;  %v3567_v24 = vld [vmem:[%s4381_s3 + $0x328] sm:$0xff]  }
 0x6f2   : > { %v3211_v47 = vpop.f32.mrb[12].mxu1 }
 0x6f3   : > { %v3212_v50 = vpop.f32.mrb[13].mxu1 }
 0x6f4   : > { %v3213_v52 = vadd.f32 %v3212_v50, %v3211_v47  ;;  %v3214_v53 = vpop.f32.mrb[14].mxu1  ;;  %v3531_v47 = vld [vmem:[%s4381_s3 + $0x2b8] sm:$0xff]  }
 0x6f5   : > { %v3215_v54 = vpop.f32.mrb[15].mxu1  ;;  %v3537_v50 = vld [vmem:[%s4379_s1 + $0x314] ss:$8 sps:$4 sm:$0xff]   ;;  %v3540_v53 = vld [vmem:[%s4379_s1 + $0x324] ss:$8 sps:$4 sm:$0xff]  }
 0x6f6   : > { %v1537_v55 = vadd.f32 %v3213_v52, %v2861_v48  ;;  %v3532_v48 = vld [vmem:[%s4379_s1 + $0x300] ss:$8 sps:$4 sm:$0xff]   ;;  %v3535_v52 = vld [vmem:[%s4379_s1 + $0x310] ss:$8 sps:$4 sm:$0xff]  }
 0x6f7   : > { %v3538_v54 = vld [vmem:[%s4379_s1 + $0x320] ss:$8 sps:$4 sm:$0xff]  }
 0x6f8   : > { %v1542_v56 = vpack.c.bf16 %v1537_v55, %v1537_v55  ;;  %v3543_v55 = vld [vmem:[%s4379_s1 + $0x334] ss:$8 sps:$4 sm:$0xff]  }
 0x6fa   : > { %1686 = vmatmul.mubr.bf16.vlgmr.msra.gmra.mrb[16].mxu0 %v1542_v56  ;;  %v3541_v56 = vld [vmem:[%s4379_s1 + $0x330] ss:$8 sps:$4 sm:$0xff]  }
 0x6fb   : > { %2016 = vmatprep.mubr.bf16.mxu0 %v3580_v2  ;;  %1985 = vmatpush1.bf16.msra.mxu0 %v3492_v60  ;;  %v3547_v60 = vld [vmem:[%s4379_s1 + $0x350] ss:$8 sps:$4 sm:$0xff]  }
 0x6fc   : > { %1986 = vmatprep.subr.bf16.mxu0 %v3497_v62  ;;  %v1897_v62 = vrot.slane %v2977_v61, %v3765_v49 }
 0x6ff   : > { %1987 = vmatpush1.bf16.msra.mxu0 %v3495_v63  ;;  %v1901_v63 = vrot.slane %v2977_v61, %v3770_v51 }
 0x700   : > { %1988 = vmatprep.subr.bf16.mxu0 %v3500_v0 }
 0x703   : > { %1989 = vmatpush1.bf16.msra.mxu0 %v3498_v1 }
 0x704   : > { %1990 = vmatprep.subr.bf16.mxu0 %v3503_v3 }
 0x707   : > { %1991 = vmatpush1.bf16.msra.mxu0 %v3501_v4 }
 0x708   : > { %1992 = vmatprep.subr.bf16.mxu0 %v3506_v5 }
 0x70b   : > { %1993 = vmatpush1.bf16.msra.mxu0 %v3504_v6 }
 0x70c   : > { %1994 = vmatprep.subr.bf16.mxu0 %v3509_v7 }
 0x70f   : > { %1995 = vmatpush1.bf16.msra.mxu0 %v3507_v8 }
 0x710   : > { %1996 = vmatprep.subr.bf16.mxu0 %v3512_v20  ;;  %v3563_v20 = vld [vmem:[%s4381_s3 + $0x318] sm:$0xff]  }
 0x713   : > { %1997 = vmatpush1.bf16.msra.mxu0 %v3510_v21  ;;  %v3564_v21 = vld [vmem:[%s4381_s3 + $0x360] sm:$0xff]  }
 0x714   : > { %1998 = vmatprep.subr.bf16.mxu0 %v3515_v22  ;;  %v3565_v22 = vld [vmem:[%s4381_s3 + $0x320] sm:$0xff]  }
 0x717   : > { %1999 = vmatpush1.bf16.msra.mxu0 %v3513_v23  ;;  %v3566_v23 = vld [vmem:[%s4381_s3 + $0x368] sm:$0xff]  }
 0x7cd   : > { %v1687_v12 = vpop.f32.mrb[16].mxu0 }
 0x7ce   : > { %v1688_v13 = vadd.f32 %v1687_v12, %v1566_v10  ;;  %v1689_v14 = vpop.f32.mrb[17].mxu0  ;;  %v3550_v10 = vld [vmem:[%s4379_s1 + $0x360] ss:$8 sps:$4 sm:$0xff]   ;;  %v3553_v12 = vld [vmem:[%s4379_s1 + $0x370] ss:$8 sps:$4 sm:$0xff]  }
 0x7cf   : > { %v1690_v15 = vadd.f32 %v1689_v14, %v1570_v11  ;;  %v1691_v16 = vpop.f32.mrb[18].mxu0  ;;  %v3555_v11 = vld [vmem:[%s4379_s1 + $0x374] ss:$8 sps:$4 sm:$0xff]   ;;  %v3557_v14 = vld [vmem:[%s4381_s3 + $0x300] sm:$0xff]  }
 0x7d0   : > { %v1692_v17 = vpop.f32.mrb[19].mxu0  ;;  %v1694_v19 = vpack.c.bf16 %v1688_v13, %v1688_v13  ;;  %v3556_v13 = vld [vmem:[%s4381_s3 + $0x340] sm:$0xff]   ;;  %v3559_v16 = vld [vmem:[%s4381_s3 + $0x308] sm:$0xff]  }
 0x7d1   : > { %v1695_v18 = vpack.c.bf16 %v1690_v15, %v1690_v15  ;;  %v3558_v15 = vld [vmem:[%s4381_s3 + $0x348] sm:$0xff]   ;;  %v3560_v17 = vld [vmem:[%s4381_s3 + $0x350] sm:$0xff]  }
 0x7d3   : > { %1865 = vmatprep.mubr.bf16.mxu1 %v1695_v18  ;;  %v3561_v18 = vld [vmem:[%s4381_s3 + $0x310] sm:$0xff]  }
 0x7d4   : > { %1866 = vmatmul.mubr.bf16.vlgmr.msra.gmra.mrb[16].mxu1 %v1694_v19  ;;  %v3562_v19 = vld [vmem:[%s4381_s3 + $0x358] sm:$0xff]  }
 0x7d5   : > { %3240 = vmatpush3.bf16.msra.mxu1 %v3517_v25  ;;  %v3568_v25 = vld [vmem:[%s4381_s3 + $0x370] sm:$0xff]  }
 0x7d6   : > { %3241 = vmatprep.subr.bf16.mxu1 %v3518_v26 }
 0x7d9   : > { %3242 = vmatpush3.bf16.msra.mxu1 %v3519_v27  ;;  %v3027_v27 = vld [vmem:[%s4382_s4 + $0x5] ss:$0 sm:$0xff] }
 0x7da   : > { %3243 = vmatprep.subr.bf16.mxu1 %v3520_v28 }
 0x7dd   : > { %3244 = vmatpush3.bf16.msra.mxu1 %v3521_v29 }
 0x7de   : > { %3245 = vmatprep.subr.bf16.mxu1 %v3522_v30 }
 0x7e1   : > { %3246 = vmatpush3.bf16.msra.mxu1 %v3523_v31 }
 0x7e2   : > { %3247 = vmatprep.subr.bf16.mxu1 %v3524_v32 }
 0x7e5   : > { %3248 = vmatpush3.bf16.msra.mxu1 %v3525_v33 }
 0x7e6   : > { %3249 = vmatprep.subr.bf16.mxu1 %v3526_v34  ;;  %v3569_v34 = vld [vmem:[%s4381_s3 + $0x330] sm:$0xff]  }
 0x7e9   : > { %3250 = vmatpush3.bf16.msra.mxu1 %v3527_v35  ;;  %v3570_v35 = vld [vmem:[%s4381_s3 + $0x378] sm:$0xff]  }
 0x7ea   : > { %3251 = vmatprep.subr.bf16.mxu1 %v3528_v36  ;;  %v3571_v36 = vld [vmem:[%s4381_s3 + $0x338] sm:$0xff]  }
 0x7ed   : > { %3252 = vmatpush3.bf16.msra.mxu1 %v3529_v45 }
 0x7ee   : > { %3253 = vmatprep.subr.bf16.mxu1 %v3530_v46 }
 0x7f1   : > { %3254 = vmatpush3.bf16.msra.mxu1 %v3531_v47 }
 0x7f2   : > { %3261 = vmatprep.subr.bf16.mxu1 %v3556_v13 }
 0x8a7   : > { %v3233_v37 = vpop.f32.mrb[16].mxu1 }
 0x8a8   : > { %v3234_v39 = vpop.f32.mrb[17].mxu1 }
 0x8a9   : > { %v3235_v40 = vadd.f32 %v3234_v39, %v3233_v37  ;;  %v3236_v41 = vpop.f32.mrb[18].mxu1  ;;  %v3060_v37 = vld [vmem:[%s4380_s2 + $0xc] sm:$0x3] }
 0x8aa   : > { %v3237_v42 = vpop.f32.mrb[19].mxu1  ;;  %v2232_v39 = vrot.slane %v3060_v37, %v3770_v51 }
 0x8ab   : > { %v1868_v43 = vadd.f32 %v3235_v40, %v2944_v38  ;;  %v2228_v38 = vrot.slane %v3060_v37, %v3765_v49 }
 0x8ad   : > { %v1873_v44 = vpack.c.bf16 %v1868_v43, %v1868_v43 }
 0x8af   : > { %2017 = vmatmul.mubr.bf16.vlgmr.msra.gmra.mrb[20].mxu0 %v1873_v44 }
 0x8b0   : > { %2347 = vmatprep.mubr.bf16.mxu0 %v3580_v2  ;;  %v3534_v2 = vld [vmem:[%s4379_s1 + $0x304] ss:$8 sps:$4 sm:$0xff]  }
 0x8b1   : > { %2315 = vmatprep.subr.bf16.mxu0 %v3534_v2  ;;  %v3110_v2 = vld [vmem:[%s4382_s4 + $0x6] ss:$0 sm:$0xff] }
 0x8b2   : > { %2316 = vmatpush1.bf16.msra.mxu0 %v3532_v48 }
 0x8b3   : > { %2317 = vmatprep.subr.bf16.mxu0 %v3537_v50 }
 0x8b6   : > { %2318 = vmatpush1.bf16.msra.mxu0 %v3535_v52 }
 0x8b7   : > { %2319 = vmatprep.subr.bf16.mxu0 %v3540_v53 }
 0x8ba   : > { %2320 = vmatpush1.bf16.msra.mxu0 %v3538_v54 }
 0x8bb   : > { %2321 = vmatprep.subr.bf16.mxu0 %v3543_v55 }
 0x8be   : > { %2322 = vmatpush1.bf16.msra.mxu0 %v3541_v56 }
 0x8bf   : > { %2323 = vmatprep.subr.bf16.mxu0 %v3546_v57 }
 0x8c2   : > { %2324 = vmatpush1.bf16.msra.mxu0 %v3544_v58 }
 0x8c3   : > { %2325 = vmatprep.subr.bf16.mxu0 %v3549_v59 }
 0x8c6   : > { %2326 = vmatpush1.bf16.msra.mxu0 %v3547_v60 }
 0x8c7   : > { %2327 = vmatprep.subr.bf16.mxu0 %v3552_v9 }
 0x8ca   : > { %2328 = vmatpush1.bf16.msra.mxu0 %v3550_v10 }
 0x8cb   : > { %2329 = vmatprep.subr.bf16.mxu0 %v3555_v11 }
 0x8ce   : > { %2330 = vmatpush1.bf16.msra.mxu0 %v3553_v12 }
 0x982   : > { %v2018_v0 = vpop.f32.mrb[20].mxu0 }
 0x983   : > { %v2019_v1 = vadd.f32 %v2018_v0, %v1897_v62  ;;  %v2020_v3 = vpop.f32.mrb[21].mxu0 }
 0x984   : > { %v2021_v4 = vadd.f32 %v2020_v3, %v1901_v63  ;;  %v2022_v5 = vpop.f32.mrb[22].mxu0 }
 0x985   : > { %v2023_v6 = vpop.f32.mrb[23].mxu0  ;;  %v2025_v8 = vpack.c.bf16 %v2019_v1, %v2019_v1 }
 0x986   : > { %v2026_v7 = vpack.c.bf16 %v2021_v4, %v2021_v4 }
 0x988   : > { %2196 = vmatprep.mubr.bf16.mxu1 %v2026_v7 }
 0x989   : > { %2197 = vmatmul.mubr.bf16.vlgmr.msra.gmra.mrb[20].mxu1 %v2025_v8 }
 0x98a   : > { %3262 = vmatpush3.bf16.msra.mxu1 %v3557_v14 }
 0x98b   : > { %3263 = vmatprep.subr.bf16.mxu1 %v3558_v15 }
 0x98e   : > { %3264 = vmatpush3.bf16.msra.mxu1 %v3559_v16 }
 0x98f   : > { %3265 = vmatprep.subr.bf16.mxu1 %v3560_v17 }
 0x992   : > { %3266 = vmatpush3.bf16.msra.mxu1 %v3561_v18 }
 0x993   : > { %3267 = vmatprep.subr.bf16.mxu1 %v3562_v19 }
 0x996   : > { %3268 = vmatpush3.bf16.msra.mxu1 %v3563_v20 }
 0x997   : > { %3269 = vmatprep.subr.bf16.mxu1 %v3564_v21 }
 0x99a   : > { %3270 = vmatpush3.bf16.msra.mxu1 %v3565_v22 }
 0x99b   : > { %3271 = vmatprep.subr.bf16.mxu1 %v3566_v23 }
 0x99e   : > { %3272 = vmatpush3.bf16.msra.mxu1 %v3567_v24 }
 0x99f   : > { %3273 = vmatprep.subr.bf16.mxu1 %v3568_v25 }
 0x9a2   : > { %3274 = vmatpush3.bf16.msra.mxu1 %v3569_v34 }
 0x9a3   : > { %3275 = vmatprep.subr.bf16.mxu1 %v3570_v35 }
 0x9a6   : > { %3276 = vmatpush3.bf16.msra.mxu1 %v3571_v36 }
 0xa5c   : > { %v3255_v26 = vpop.f32.mrb[20].mxu1 }
 0xa5d   : > { %v3256_v28 = vpop.f32.mrb[21].mxu1 }
 0xa5e   : > { %v3257_v29 = vadd.f32 %v3256_v28, %v3255_v26  ;;  %v3258_v30 = vpop.f32.mrb[22].mxu1 }
 0xa5f   : > { %v3259_v31 = vpop.f32.mrb[23].mxu1 }
 0xa60   : > { %v2199_v32 = vadd.f32 %v3257_v29, %v3027_v27 }
 0xa62   : > { %v2204_v33 = vpack.c.bf16 %v2199_v32, %v2199_v32 }
 0xa64   : > { %2348 = vmatmul.mubr.bf16.vlgmr.msra.gmra.mrb[24].mxu0 %v2204_v33 }
 0xb37   : > { %v2349_v40 = vpop.f32.mrb[24].mxu0 }
 0xb38   : > { %v2350_v41 = vadd.f32 %v2349_v40, %v2228_v38  ;;  %v2351_v42 = vpop.f32.mrb[25].mxu0 }
 0xb39   : > { %v2352_v43 = vadd.f32 %v2351_v42, %v2232_v39  ;;  %v2353_v44 = vpop.f32.mrb[26].mxu0 }
 0xb3a   : > { %v2354_v45 = vpop.f32.mrb[27].mxu0  ;;  %v2356_v47 = vpack.c.bf16 %v2350_v41, %v2350_v41 }
 0xb3b   : > { %v2357_v46 = vpack.c.bf16 %v2352_v43, %v2352_v43 }
 0xb3d   : > { %2527 = vmatprep.mubr.bf16.mxu1 %v2357_v46 }
 0xb3e   : > { %2528 = vmatmul.mubr.bf16.vlgmr.msra.gmra.mrb[24].mxu1 %v2356_v47 }
 0xc11   : > { %v3277_v48 = vpop.f32.mrb[24].mxu1 }
 0xc12   : > { %v3278_v50 = vpop.f32.mrb[25].mxu1 }
 0xc13   : > { %v3279_v49 = vadd.f32 %v3278_v50, %v3277_v48  ;;  %v3280_v52 = vpop.f32.mrb[26].mxu1 }
 0xc14   : > { %v3281_v51 = vpop.f32.mrb[27].mxu1 }
 0xc15   : > { %v2530_v53 = vadd.f32 %v3279_v49, %v3110_v2 }
 0xc17   : > { %2535 = vst [vmem:[%s219_s14] sm:$0xff] %v2530_v53 }
 0xc18 PF: > { %s15_s18 = sadd.s32 1, %s3578_s18  }
 0xc19   : > { %p12_p4 = scmp.ge.s32.totalorder %s15_s18, 4  }
 0xc1b   :  { %14 = sbr.rel (!%p12_p4) target bundleno = 1 (0x1), region = 94 }

</bundles_post_ra>
